<compile_context>
chip_gen: v5e
topology: v5e:2x2
jax: 0.10.0
libtpu: 0.0.40
codegen_flags: <defaults>
</compile_context>

<pallas_src>
import math
from functools import partial

import numpy as np
import jax
import jax.numpy as jnp
from jax.experimental import pallas as pl
from jax.experimental.pallas import tpu as pltpu  # noqa: F401  (TPU backend)

# --- model config (small, deterministic, consistent with cfg in __init__) ---
N_EMBD = 32          # cfg.n_embd
N_HEAD = 2           # cfg.n_head
N_LAYER = 2          # cfg.n_layer
VOCAB = 16           # cfg.vocab_size  (embedding table has VOCAB + 1 rows)
FFN = 4 * N_EMBD     # dim_feedforward = 4 * n_embd  (=128)
HD = N_EMBD // N_HEAD
EPS = 1e-5           # nn.LayerNorm default
HEAD_PAD = 128       # lane-dense logits slab width (sliced to VOCAB in wrapper)
MAX_T = 16           # max token-sequence length baked into the PE rows of the slab

# --- single weight-slab layout: one lane-dense (SLAB_ROWS, 128) f32 array ----
R_EMB = 0                               # tok_emb table: rows 0 .. VOCAB
R_PE = VOCAB + 1                        # positional encodings: rows 17 .. 17+MAX_T-1
EMB_PE_ROWS = VOCAB + 1 + MAX_T         # 33: one contiguous gather table (emb | PE)
R_LAYER0 = 40                           # first layer block (8-row aligned)
# per-layer block (all sub-blocks start at 8-row-aligned offsets):
#   +0   : [W_q|W_k|W_v] folded (32 rows, lanes 0:96) | W_o (lanes 96:128)
#   +32  : [b_q|b_k|b_v] folded (lanes 0:96) | b_o (lanes 96:128)    (1 row)
#   +40  : W1 folded (32 rows, lanes 0:128)
#   +72  : b1 folded (1 row)
#   +80  : W2 (128 rows, lanes 0:32)
#   +208 : b2 (1 row, lanes 0:32)
LAYER_STRIDE = 216
R_HEAD = R_LAYER0 + N_LAYER * LAYER_STRIDE   # 472: lnf-folded head W (32 rows), +32: bias
SLAB_ROWS = R_HEAD + 40                      # 512 rows x 128 lanes x 4 B = 256 KiB


def _normalize(x):
    """LayerNorm without affine (gamma/beta folded into the next linear)."""
    mu = jnp.mean(x, axis=-1, keepdims=True)
    var = jnp.mean(jnp.square(x - mu), axis=-1, keepdims=True)
    return (x - mu) * jax.lax.rsqrt(var + EPS)


def _layernorm(x, w, b):   # full LayerNorm, used only by the pure-JAX reference
    mu = jnp.mean(x, axis=-1, keepdims=True)
    var = jnp.mean(jnp.square(x - mu), axis=-1, keepdims=True)
    return (x - mu) * jax.lax.rsqrt(var + EPS) * w + b


def _gelu_exact(x):
    # PyTorch activation='gelu' => exact erf-based GELU
    return 0.5 * x * (1.0 + jax.lax.erf(x / jnp.sqrt(jnp.float32(2.0))))


# ----------------------------------------------------------------------------
# Fused Pallas kernel: embedding + PE + concat + both layers + lnf + head.
# ----------------------------------------------------------------------------
def _fused_kernel(gidx_ref, ctx_ref, slab_ref, out_ref, *, batch, t_len, tc_len):
    D, H, L = N_EMBD, N_HEAD, N_LAYER
    S = tc_len + t_len
    BS = batch * S
    BT = batch * t_len
    ONE, ZERO = jnp.float32(1.0), jnp.float32(0.0)

    # ---- token embedding + positional encoding + context concat -------------
    # gidx columns: [vocab row | PE row | context row], -1 where not applicable.
    # Two tiny one-hot gather matmuls replace the host-side gather / sin-cos /
    # concat; context rows get zero from the table matmul and vice versa.
    gidx = gidx_ref[...]                                        # (BS, 3) int32
    tok_sel, pe_sel, ctx_sel = gidx[:, 0:1], gidx[:, 1:2], gidx[:, 2:3]
    tbl_iota = jax.lax.broadcasted_iota(jnp.int32, (BS, EMB_PE_ROWS), 1)
    gmat = jnp.where((tbl_iota == tok_sel) | (tbl_iota == pe_sel), ONE, ZERO)
    table = slab_ref[R_EMB:R_EMB + EMB_PE_ROWS, 0:D]            # (33, 32): emb | PE
    x = jnp.dot(gmat, table, preferred_element_type=jnp.float32)           # (BS, D)
    ctx_iota = jax.lax.broadcasted_iota(jnp.int32, (BS, batch * tc_len), 1)
    cmat = jnp.where(ctx_iota == ctx_sel, ONE, ZERO)
    x = x + jnp.dot(cmat, ctx_ref[...], preferred_element_type=jnp.float32)
    # drop (eval) = identity

    # ---- block-diagonal causal mask over the batch-fused (BS, BS) scores ----
    # allowed(i, j) <=> same batch block AND j <= i; built without int division.
    ri = jax.lax.broadcasted_iota(jnp.int32, (BS, BS), 0)
    ci = jax.lax.broadcasted_iota(jnp.int32, (BS, BS), 1)
    same = None
    for b in range(batch):
        blk = (ri >= b * S) & (ri < (b + 1) * S) & (ci >= b * S) & (ci < (b + 1) * S)
        same = blk if same is None else (same | blk)
    mask = jnp.where((ci <= ri) & same, ZERO, jnp.float32(-1e30))

    for l in range(L):
        base = R_LAYER0 + l * LAYER_STRIDE
        w_qkvo = slab_ref[base:base + D, :]                      # (32, 128)
        b_qkvo = slab_ref[base + D:base + D + 1, :]              # (1, 128)
        w1 = slab_ref[base + 40:base + 40 + D, 0:FFN]            # (32, 128)
        b1 = slab_ref[base + 72:base + 73, 0:FFN]                # (1, 128)
        w2 = slab_ref[base + 80:base + 80 + FFN, 0:D]            # (128, 32)
        b2 = slab_ref[base + 208:base + 209, 0:D]                # (1, 32)

        # ---- pre-LN MHA: x = x + MHA(LN1(x)) ----
        # ln1 affine and the 1/sqrt(hd) query scale are folded into W_qkv/b_qkv.
        xn = _normalize(x)
        qkv = jnp.dot(xn, w_qkvo[:, 0:3 * D],
                      preferred_element_type=jnp.float32) + b_qkvo[:, 0:3 * D]  # (BS, 96)
        heads = []
        for h in range(H):
            q = qkv[:, h * HD:(h + 1) * HD]
            k = qkv[:, D + h * HD:D + (h + 1) * HD]
            v = qkv[:, 2 * D + h * HD:2 * D + (h + 1) * HD]
            s = jnp.dot(q, k.T, preferred_element_type=jnp.float32) + mask      # (BS, BS)
            s = s - jnp.max(s, axis=-1, keepdims=True)
            p = jnp.exp(s)
            p = p * pl.reciprocal(jnp.sum(p, axis=-1, keepdims=True), approx=True)
            heads.append(jnp.dot(p, v, preferred_element_type=jnp.float32))     # (BS, HD)
        o = jnp.concatenate(heads, axis=-1)                                      # (BS, D)
        x = x + jnp.dot(o, w_qkvo[:, 3 * D:4 * D],
                        preferred_element_type=jnp.float32) + b_qkvo[:, 3 * D:4 * D]

        # ---- pre-LN FFN: x = x + W2(gelu(W1(LN2(x)))) (ln2 folded into W1/b1) ----
        h1 = jnp.dot(_normalize(x), w1, preferred_element_type=jnp.float32) + b1
        h1 = _gelu_exact(h1)
        x = x + jnp.dot(h1, w2, preferred_element_type=jnp.float32) + b2

    # ---- drop context rows (x[:, Tc:, :]) via one selection matmul ----------
    oo = jax.lax.broadcasted_iota(jnp.int32, (BT, BS), 0)
    rr = jax.lax.broadcasted_iota(jnp.int32, (BT, BS), 1)
    sel = None
    for b in range(batch):
        # output row o = b*t_len + t  <-  input row o + (b+1)*tc_len
        blk = (oo >= b * t_len) & (oo < (b + 1) * t_len) & (rr == oo + (b + 1) * tc_len)
        sel = blk if sel is None else (sel | blk)
    x_out = jnp.dot(jnp.where(sel, ONE, ZERO), x,
                    preferred_element_type=jnp.float32)                          # (BT, D)

    # ---- final LayerNorm (affine folded into head) + head, lane-dense output -
    xn = _normalize(x_out)
    w_h = slab_ref[R_HEAD:R_HEAD + D, :]                          # (32, 128)
    b_h = slab_ref[R_HEAD + D:R_HEAD + D + 1, :]                  # (1, 128)
    out_ref[...] = jnp.dot(xn, w_h, preferred_element_type=jnp.float32) + b_h


# ----------------------------------------------------------------------------
# host-side weight packing: constant folding + single lane-dense slab
# ----------------------------------------------------------------------------
def pack_params(params):
    D = N_EMBD
    scale = 1.0 / math.sqrt(HD)
    slab = jnp.zeros((SLAB_ROWS, 128), jnp.float32)

    # token-embedding table + precomputed positional encodings (gather table)
    slab = slab.at[R_EMB:R_EMB + VOCAB + 1, :D].set(params['tok_emb'])
    slab = slab.at[R_PE:R_PE + MAX_T, :D].set(positional_encoding_1d(MAX_T, D))

    for l, lp in enumerate(params['layers']):
        base = R_LAYER0 + l * LAYER_STRIDE
        g1, t1 = lp['ln1w'][0], lp['ln1b'][0]
        # fold ln1 affine (pre-LN) + 1/sqrt(hd) query scale into fused QKV proj
        wq = (g1[:, None] * lp['wq']) * scale
        bq = (t1 @ lp['wq'] + lp['bq'][0]) * scale
        wk = g1[:, None] * lp['wk']
        bk = t1 @ lp['wk'] + lp['bk'][0]
        wv = g1[:, None] * lp['wv']
        bv = t1 @ lp['wv'] + lp['bv'][0]
        slab = slab.at[base:base + D, 0:3 * D].set(jnp.concatenate([wq, wk, wv], axis=1))
        slab = slab.at[base:base + D, 3 * D:4 * D].set(lp['wo'])
        slab = slab.at[base + D, 0:3 * D].set(jnp.concatenate([bq, bk, bv], axis=0))
        slab = slab.at[base + D, 3 * D:4 * D].set(lp['bo'][0])

        g2, t2 = lp['ln2w'][0], lp['ln2b'][0]
        slab = slab.at[base + 40:base + 40 + D, 0:FFN].set(g2[:, None] * lp['w1'])
        slab = slab.at[base + 72, 0:FFN].set(t2 @ lp['w1'] + lp['b1'][0])
        slab = slab.at[base + 80:base + 80 + FFN, 0:D].set(lp['w2'])
        slab = slab.at[base + 208, 0:D].set(lp['b2'][0])

    gf, tf = params['lnfw'][0], params['lnfb'][0]
    slab = slab.at[R_HEAD:R_HEAD + D, 0:VOCAB].set(gf[:, None] * params['wh'])
    slab = slab.at[R_HEAD + D, 0:VOCAB].set(tf @ params['wh'] + params['bh'][0])
    return dict(slab=slab)


# ----------------------------------------------------------------------------
# glue: tiny integer index columns + fused kernel call
# ----------------------------------------------------------------------------
def positional_encoding_1d(seq_len, d):
    """Matches positional_encodings.PositionalEncoding1D (interleaved sin/cos)."""
    channels = int(math.ceil(d / 2) * 2)
    inv_freq = 1.0 / (10000.0 ** (jnp.arange(0, channels, 2, dtype=jnp.float32)
                                  / channels))
    pos = jnp.arange(seq_len, dtype=jnp.float32)
    sin_inp = pos[:, None] * inv_freq[None, :]                      # (T, C/2)
    emb = jnp.stack([jnp.sin(sin_inp), jnp.cos(sin_inp)], axis=-1)  # (T, C/2, 2)
    emb = emb.reshape(seq_len, channels)
    return emb[:, :d]


def skill_gpt_forward(idx, context, packed):
    """SkillGPT.forward(idx, context) -> logits  (targets=None, return_offset=False)."""
    B, T = idx.shape
    TC = context.shape[1]
    assert T <= MAX_T, "increase MAX_T (PE rows baked into the weight slab)"
    S = TC + T
    BS, BT = B * S, B * T

    # per-row source indices for the in-kernel gather matmuls (only int glue left)
    tok_col = jnp.pad(idx.astype(jnp.int32), ((0, 0), (TC, 0)),
                      constant_values=-1).reshape(BS, 1)            # vocab row or -1
    pos = np.arange(S)
    pe_col = np.where(pos >= TC, (VOCAB + 1) + (pos - TC), -1).astype(np.int32)
    pe_col = np.tile(pe_col, B).reshape(BS, 1)                      # PE table row or -1
    ctx_col = np.where(pos[None, :] < TC,
                       np.arange(B)[:, None] * TC + pos[None, :], -1)
    ctx_col = ctx_col.astype(np.int32).reshape(BS, 1)               # context row or -1
    gidx = jnp.concatenate([tok_col, jnp.asarray(pe_col), jnp.asarray(ctx_col)], axis=1)

    ctx_flat = context.reshape(B * TC, N_EMBD).astype(jnp.float32)

    out = pl.pallas_call(
        partial(_fused_kernel, batch=B, t_len=T, tc_len=TC),
        out_shape=jax.ShapeDtypeStruct((BT, HEAD_PAD), jnp.float32),
    )(gidx, ctx_flat, packed['slab'])

    return out.reshape(B, T, HEAD_PAD)[..., :VOCAB]                 # strip lane padding


# ----------------------------------------------------------------------------
# deterministic synthetic parameters (natural PyTorch-like layout)
# ----------------------------------------------------------------------------
def init_params(key):
    keys = iter(jax.random.split(key, 64))

    def nrm(shape, scale=0.02):
        return (scale * jax.random.normal(next(keys), shape)).astype(jnp.float32)

    def ln_w(shape):   # non-trivial LN affine so the pack-time folding is exercised
        return (1.0 + 0.1 * jax.random.normal(next(keys), shape)).astype(jnp.float32)

    def ln_b(shape):
        return (0.1 * jax.random.normal(next(keys), shape)).astype(jnp.float32)

    params = {
        'tok_emb': nrm((VOCAB + 1, N_EMBD)),
        'lnfw': ln_w((1, N_EMBD)),
        'lnfb': ln_b((1, N_EMBD)),
        'wh': nrm((N_EMBD, VOCAB)),
        'bh': nrm((1, VOCAB)),
        'layers': [],
    }
    for _ in range(N_LAYER):
        params['layers'].append({
            'ln1w': ln_w((1, N_EMBD)), 'ln1b': ln_b((1, N_EMBD)),
            'wq': nrm((N_EMBD, N_EMBD)), 'bq': nrm((1, N_EMBD)),
            'wk': nrm((N_EMBD, N_EMBD)), 'bk': nrm((1, N_EMBD)),
            'wv': nrm((N_EMBD, N_EMBD)), 'bv': nrm((1, N_EMBD)),
            'wo': nrm((N_EMBD, N_EMBD)), 'bo': nrm((1, N_EMBD)),
            'ln2w': ln_w((1, N_EMBD)), 'ln2b': ln_b((1, N_EMBD)),
            'w1': nrm((N_EMBD, FFN)), 'b1': nrm((1, FFN)),
            'w2': nrm((FFN, N_EMBD)), 'b2': nrm((1, N_EMBD)),
        })
    return params


# ----------------------------------------------------------------------------
# pure-JAX reference (un-folded weights) for a correctness sanity check
# ----------------------------------------------------------------------------
def causal_mask(S):
    i = jnp.arange(S)
    return jnp.where(i[None, :] > i[:, None], -jnp.inf, 0.0).astype(jnp.float32)


def reference_forward(idx, context, params):
    B, T = idx.shape
    tok = jnp.take(params['tok_emb'], idx, axis=0)
    tok = tok + positional_encoding_1d(T, N_EMBD)[None]
    x = jnp.concatenate([context, tok], axis=1)
    S = x.shape[1]
    mask = causal_mask(S)
    for lp in params['layers']:
        xn = _layernorm(x, lp['ln1w'], lp['ln1b'])
        q = xn @ lp['wq'] + lp['bq']
        k = xn @ lp['wk'] + lp['bk']
        v = xn @ lp['wv'] + lp['bv']
        qh = q.reshape(B, S, N_HEAD, HD).transpose(0, 2, 1, 3)
        kh = k.reshape(B, S, N_HEAD, HD).transpose(0, 2, 1, 3)
        vh = v.reshape(B, S, N_HEAD, HD).transpose(0, 2, 1, 3)
        s = jnp.einsum('bhqd,bhkd->bhqk', qh, kh) / math.sqrt(HD) + mask
        p = jax.nn.softmax(s, axis=-1)
        o = jnp.einsum('bhqk,bhkd->bhqd', p, vh)
        o = o.transpose(0, 2, 1, 3).reshape(B, S, N_EMBD)
        x = x + (o @ lp['wo'] + lp['bo'])
        xn2 = _layernorm(x, lp['ln2w'], lp['ln2b'])
        h = _gelu_exact(xn2 @ lp['w1'] + lp['b1'])
        x = x + (h @ lp['w2'] + lp['b2'])
    x = x[:, context.shape[1]:, :]
    x = _layernorm(x, params['lnfw'], params['lnfb'])
    return x @ params['wh'] + params['bh']


# ----------------------------------------------------------------------------
if __name__ == "__main__":
    key = jax.random.PRNGKey(0)
    k_idx, k_ctx, k_par = jax.random.split(key, 3)

    B, T, TC = 2, 7, 1          # context from ObsEncoder is (B, 1, n_embd)
    idx = jax.random.randint(k_idx, (B, T), 0, VOCAB + 1, dtype=jnp.int32)
    context = jax.random.normal(k_ctx, (B, TC, N_EMBD), dtype=jnp.float32)
    params = init_params(k_par)
    packed = pack_params(params)

    logits = skill_gpt_forward(idx, context, packed)
    logits = jax.block_until_ready(logits)
    assert logits.shape == (B, T, VOCAB)
    assert bool(jnp.all(jnp.isfinite(logits)))

    with jax.default_matmul_precision("highest"):
        ref = reference_forward(idx, context, params)
    max_err = float(jnp.max(jnp.abs(logits - ref)))
    assert max_err < 5e-3, f"mismatch vs reference: {max_err}"

    print("KERNEL_OK")
</pallas_src>

<mosaic_0001>
module attributes {stable_mosaic.version = 11 : i64} {
  func.func @_fused_kernel(%arg0: memref<16x3xi32, #tpu.memory_space<vmem>>, %arg1: memref<2x32xf32, #tpu.memory_space<vmem>>, %arg2: memref<512x128xf32, #tpu.memory_space<vmem>>, %arg3: memref<14x128xf32, #tpu.memory_space<vmem>>) attributes {dimension_semantics = [], scalar_prefetch = 0 : i64, scratch_operands = 0 : i64, tpu.core_type = #tpu.core_type<tc>} {
    %c0 = arith.constant 0 : index
    %c0_0 = arith.constant 0 : index
    %0 = vector.load %arg0[%c0, %c0_0] : memref<16x3xi32, #tpu.memory_space<vmem>>, vector<16x3xi32>
    %1 = vector.extract_strided_slice %0 {offsets = [0, 0], sizes = [16, 1], strides = [1, 1]} : vector<16x3xi32> to vector<16x1xi32>
    %2 = vector.extract_strided_slice %0 {offsets = [0, 1], sizes = [16, 1], strides = [1, 1]} : vector<16x3xi32> to vector<16x1xi32>
    %3 = vector.extract_strided_slice %0 {offsets = [0, 2], sizes = [16, 1], strides = [1, 1]} : vector<16x3xi32> to vector<16x1xi32>
    %4 = tpu.iota {dimensions = array<i32: 1>} : vector<16x33xi32>
    %5 = vector.broadcast %1 : vector<16x1xi32> to vector<16x33xi32>
    %6 = arith.cmpi eq, %4, %5 : vector<16x33xi32>
    %7 = vector.broadcast %2 : vector<16x1xi32> to vector<16x33xi32>
    %8 = arith.cmpi eq, %4, %7 : vector<16x33xi32>
    %9 = arith.ori %6, %8 : vector<16x33xi1>
    %cst = arith.constant 1.000000e+00 : f32
    %cst_1 = arith.constant 0.000000e+00 : f32
    %10 = vector.broadcast %cst : f32 to vector<16x33xf32>
    %11 = vector.broadcast %cst_1 : f32 to vector<16x33xf32>
    %12 = arith.select %9, %10, %11 : vector<16x33xi1>, vector<16x33xf32>
    %c0_2 = arith.constant 0 : index
    %c0_3 = arith.constant 0 : index
    %13 = vector.load %arg2[%c0_2, %c0_3] : memref<512x128xf32, #tpu.memory_space<vmem>>, vector<33x32xf32>
    %cst_4 = arith.constant dense<0.000000e+00> : vector<16x32xf32>
    %14 = tpu.matmul %12, %13, %cst_4 {dimension_numbers = #tpu.dot_dimension_numbers<[1], [0], [0], [1], [0, 0, 1, 1], [], []>} : vector<16x33xf32>, vector<33x32xf32>, vector<16x32xf32> -> vector<16x32xf32>
    %15 = tpu.iota {dimensions = array<i32: 1>} : vector<16x2xi32>
    %16 = vector.broadcast %3 : vector<16x1xi32> to vector<16x2xi32>
    %17 = arith.cmpi eq, %15, %16 : vector<16x2xi32>
    %cst_5 = arith.constant 1.000000e+00 : f32
    %cst_6 = arith.constant 0.000000e+00 : f32
    %18 = vector.broadcast %cst_5 : f32 to vector<16x2xf32>
    %19 = vector.broadcast %cst_6 : f32 to vector<16x2xf32>
    %20 = arith.select %17, %18, %19 : vector<16x2xi1>, vector<16x2xf32>
    %c0_7 = arith.constant 0 : index
    %c0_8 = arith.constant 0 : index
    %21 = vector.load %arg1[%c0_7, %c0_8] : memref<2x32xf32, #tpu.memory_space<vmem>>, vector<2x32xf32>
    %cst_9 = arith.constant dense<0.000000e+00> : vector<16x32xf32>
    %22 = tpu.matmul %20, %21, %cst_9 {dimension_numbers = #tpu.dot_dimension_numbers<[1], [0], [0], [1], [0, 0, 1, 1], [], []>} : vector<16x2xf32>, vector<2x32xf32>, vector<16x32xf32> -> vector<16x32xf32>
    %23 = arith.addf %14, %22 : vector<16x32xf32>
    %24 = tpu.iota {dimensions = array<i32: 0>} : vector<16x16xi32>
    %25 = tpu.iota {dimensions = array<i32: 1>} : vector<16x16xi32>
    %c0_i32 = arith.constant 0 : i32
    %26 = vector.broadcast %c0_i32 : i32 to vector<16x16xi32>
    %27 = arith.cmpi sge, %24, %26 : vector<16x16xi32>
    %c8_i32 = arith.constant 8 : i32
    %28 = vector.broadcast %c8_i32 : i32 to vector<16x16xi32>
    %29 = arith.cmpi slt, %24, %28 : vector<16x16xi32>
    %30 = arith.andi %27, %29 : vector<16x16xi1>
    %c0_i32_10 = arith.constant 0 : i32
    %31 = vector.broadcast %c0_i32_10 : i32 to vector<16x16xi32>
    %32 = arith.cmpi sge, %25, %31 : vector<16x16xi32>
    %33 = arith.andi %30, %32 : vector<16x16xi1>
    %c8_i32_11 = arith.constant 8 : i32
    %34 = vector.broadcast %c8_i32_11 : i32 to vector<16x16xi32>
    %35 = arith.cmpi slt, %25, %34 : vector<16x16xi32>
    %36 = arith.andi %33, %35 : vector<16x16xi1>
    %c8_i32_12 = arith.constant 8 : i32
    %37 = vector.broadcast %c8_i32_12 : i32 to vector<16x16xi32>
    %38 = arith.cmpi sge, %24, %37 : vector<16x16xi32>
    %c16_i32 = arith.constant 16 : i32
    %39 = vector.broadcast %c16_i32 : i32 to vector<16x16xi32>
    %40 = arith.cmpi slt, %24, %39 : vector<16x16xi32>
    %41 = arith.andi %38, %40 : vector<16x16xi1>
    %c8_i32_13 = arith.constant 8 : i32
    %42 = vector.broadcast %c8_i32_13 : i32 to vector<16x16xi32>
    %43 = arith.cmpi sge, %25, %42 : vector<16x16xi32>
    %44 = arith.andi %41, %43 : vector<16x16xi1>
    %c16_i32_14 = arith.constant 16 : i32
    %45 = vector.broadcast %c16_i32_14 : i32 to vector<16x16xi32>
    %46 = arith.cmpi slt, %25, %45 : vector<16x16xi32>
    %47 = arith.andi %44, %46 : vector<16x16xi1>
    %48 = arith.ori %36, %47 : vector<16x16xi1>
    %49 = arith.cmpi sle, %25, %24 : vector<16x16xi32>
    %50 = arith.andi %49, %48 : vector<16x16xi1>
    %cst_15 = arith.constant 0.000000e+00 : f32
    %cst_16 = arith.constant -1.000000e+30 : f32
    %51 = vector.broadcast %cst_15 : f32 to vector<16x16xf32>
    %52 = vector.broadcast %cst_16 : f32 to vector<16x16xf32>
    %53 = arith.select %50, %51, %52 : vector<16x16xi1>, vector<16x16xf32>
    %c40 = arith.constant 40 : index
    %c0_17 = arith.constant 0 : index
    %54 = vector.load %arg2[%c40, %c0_17] : memref<512x128xf32, #tpu.memory_space<vmem>>, vector<32x128xf32>
    %c72 = arith.constant 72 : index
    %c0_18 = arith.constant 0 : index
    %55 = vector.load %arg2[%c72, %c0_18] : memref<512x128xf32, #tpu.memory_space<vmem>>, vector<1x128xf32>
    %c80 = arith.constant 80 : index
    %c0_19 = arith.constant 0 : index
    %56 = vector.load %arg2[%c80, %c0_19] : memref<512x128xf32, #tpu.memory_space<vmem>>, vector<32x128xf32>
    %c112 = arith.constant 112 : index
    %c0_20 = arith.constant 0 : index
    %57 = vector.load %arg2[%c112, %c0_20] : memref<512x128xf32, #tpu.memory_space<vmem>>, vector<1x128xf32>
    %c120 = arith.constant 120 : index
    %c0_21 = arith.constant 0 : index
    %58 = vector.load %arg2[%c120, %c0_21] : memref<512x128xf32, #tpu.memory_space<vmem>>, vector<128x32xf32>
    %c248 = arith.constant 248 : index
    %c0_22 = arith.constant 0 : index
    %59 = vector.load %arg2[%c248, %c0_22] : memref<512x128xf32, #tpu.memory_space<vmem>>, vector<1x32xf32>
    %cst_23 = arith.constant dense<0.000000e+00> : vector<16xf32>
    %60 = vector.multi_reduction <add>, %23, %cst_23 [1] : vector<16x32xf32> to vector<16xf32>
    %61 = vector.shape_cast %60 : vector<16xf32> to vector<16x1xf32>
    %cst_24 = arith.constant 3.200000e+01 : f32
    %62 = vector.broadcast %cst_24 : f32 to vector<16x1xf32>
    %63 = arith.divf %61, %62 : vector<16x1xf32>
    %64 = vector.broadcast %63 : vector<16x1xf32> to vector<16x32xf32>
    %65 = arith.subf %23, %64 : vector<16x32xf32>
    %66 = arith.mulf %65, %65 : vector<16x32xf32>
    %cst_25 = arith.constant dense<0.000000e+00> : vector<16xf32>
    %67 = vector.multi_reduction <add>, %66, %cst_25 [1] : vector<16x32xf32> to vector<16xf32>
    %68 = vector.shape_cast %67 : vector<16xf32> to vector<16x1xf32>
    %cst_26 = arith.constant 3.200000e+01 : f32
    %69 = vector.broadcast %cst_26 : f32 to vector<16x1xf32>
    %70 = arith.divf %68, %69 : vector<16x1xf32>
    %71 = vector.broadcast %63 : vector<16x1xf32> to vector<16x32xf32>
    %72 = arith.subf %23, %71 : vector<16x32xf32>
    %cst_27 = arith.constant 9.99999974E-6 : f32
    %73 = vector.broadcast %cst_27 : f32 to vector<16x1xf32>
    %74 = arith.addf %70, %73 : vector<16x1xf32>
    %75 = math.rsqrt %74 : vector<16x1xf32>
    %76 = vector.broadcast %75 : vector<16x1xf32> to vector<16x32xf32>
    %77 = arith.mulf %72, %76 : vector<16x32xf32>
    %78 = vector.extract_strided_slice %54 {offsets = [0, 0], sizes = [32, 96], strides = [1, 1]} : vector<32x128xf32> to vector<32x96xf32>
    %cst_28 = arith.constant dense<0.000000e+00> : vector<16x96xf32>
    %79 = tpu.matmul %77, %78, %cst_28 {dimension_numbers = #tpu.dot_dimension_numbers<[1], [0], [0], [1], [0, 0, 1, 1], [], []>} : vector<16x32xf32>, vector<32x96xf32>, vector<16x96xf32> -> vector<16x96xf32>
    %80 = vector.extract_strided_slice %55 {offsets = [0, 0], sizes = [1, 96], strides = [1, 1]} : vector<1x128xf32> to vector<1x96xf32>
    %81 = vector.broadcast %80 : vector<1x96xf32> to vector<16x96xf32>
    %82 = arith.addf %79, %81 : vector<16x96xf32>
    %83 = vector.extract_strided_slice %82 {offsets = [0, 0], sizes = [16, 16], strides = [1, 1]} : vector<16x96xf32> to vector<16x16xf32>
    %84 = vector.extract_strided_slice %82 {offsets = [0, 32], sizes = [16, 16], strides = [1, 1]} : vector<16x96xf32> to vector<16x16xf32>
    %85 = vector.extract_strided_slice %82 {offsets = [0, 64], sizes = [16, 16], strides = [1, 1]} : vector<16x96xf32> to vector<16x16xf32>
    %86 = tpu.transpose %84, [1, 0] : vector<16x16xf32> -> vector<16x16xf32>
    %cst_29 = arith.constant dense<0.000000e+00> : vector<16x16xf32>
    %87 = tpu.matmul %83, %86, %cst_29 {dimension_numbers = #tpu.dot_dimension_numbers<[1], [0], [0], [1], [0, 0, 1, 1], [], []>} : vector<16x16xf32>, vector<16x16xf32>, vector<16x16xf32> -> vector<16x16xf32>
    %88 = arith.addf %87, %53 : vector<16x16xf32>
    %cst_30 = arith.constant dense<0xFF800000> : vector<16xf32>
    %89 = vector.multi_reduction <maximumf>, %88, %cst_30 [1] : vector<16x16xf32> to vector<16xf32>
    %90 = vector.shape_cast %89 : vector<16xf32> to vector<16x1xf32>
    %91 = vector.broadcast %90 : vector<16x1xf32> to vector<16x16xf32>
    %92 = arith.subf %88, %91 : vector<16x16xf32>
    %93 = math.exp %92 : vector<16x16xf32>
    %cst_31 = arith.constant dense<0.000000e+00> : vector<16xf32>
    %94 = vector.multi_reduction <add>, %93, %cst_31 [1] : vector<16x16xf32> to vector<16xf32>
    %95 = vector.shape_cast %94 : vector<16xf32> to vector<16x1xf32>
    %96 = tpu.reciprocal %95 {approx = true} : vector<16x1xf32> -> vector<16x1xf32>
    %97 = vector.broadcast %96 : vector<16x1xf32> to vector<16x16xf32>
    %98 = arith.mulf %93, %97 : vector<16x16xf32>
    %cst_32 = arith.constant dense<0.000000e+00> : vector<16x16xf32>
    %99 = tpu.matmul %98, %85, %cst_32 {dimension_numbers = #tpu.dot_dimension_numbers<[1], [0], [0], [1], [0, 0, 1, 1], [], []>} : vector<16x16xf32>, vector<16x16xf32>, vector<16x16xf32> -> vector<16x16xf32>
    %100 = vector.extract_strided_slice %82 {offsets = [0, 16], sizes = [16, 16], strides = [1, 1]} : vector<16x96xf32> to vector<16x16xf32>
    %101 = vector.extract_strided_slice %82 {offsets = [0, 48], sizes = [16, 16], strides = [1, 1]} : vector<16x96xf32> to vector<16x16xf32>
    %102 = vector.extract_strided_slice %82 {offsets = [0, 80], sizes = [16, 16], strides = [1, 1]} : vector<16x96xf32> to vector<16x16xf32>
    %103 = tpu.transpose %101, [1, 0] : vector<16x16xf32> -> vector<16x16xf32>
    %cst_33 = arith.constant dense<0.000000e+00> : vector<16x16xf32>
    %104 = tpu.matmul %100, %103, %cst_33 {dimension_numbers = #tpu.dot_dimension_numbers<[1], [0], [0], [1], [0, 0, 1, 1], [], []>} : vector<16x16xf32>, vector<16x16xf32>, vector<16x16xf32> -> vector<16x16xf32>
    %105 = arith.addf %104, %53 : vector<16x16xf32>
    %cst_34 = arith.constant dense<0xFF800000> : vector<16xf32>
    %106 = vector.multi_reduction <maximumf>, %105, %cst_34 [1] : vector<16x16xf32> to vector<16xf32>
    %107 = vector.shape_cast %106 : vector<16xf32> to vector<16x1xf32>
    %108 = vector.broadcast %107 : vector<16x1xf32> to vector<16x16xf32>
    %109 = arith.subf %105, %108 : vector<16x16xf32>
    %110 = math.exp %109 : vector<16x16xf32>
    %cst_35 = arith.constant dense<0.000000e+00> : vector<16xf32>
    %111 = vector.multi_reduction <add>, %110, %cst_35 [1] : vector<16x16xf32> to vector<16xf32>
    %112 = vector.shape_cast %111 : vector<16xf32> to vector<16x1xf32>
    %113 = tpu.reciprocal %112 {approx = true} : vector<16x1xf32> -> vector<16x1xf32>
    %114 = vector.broadcast %113 : vector<16x1xf32> to vector<16x16xf32>
    %115 = arith.mulf %110, %114 : vector<16x16xf32>
    %cst_36 = arith.constant dense<0.000000e+00> : vector<16x16xf32>
    %116 = tpu.matmul %115, %102, %cst_36 {dimension_numbers = #tpu.dot_dimension_numbers<[1], [0], [0], [1], [0, 0, 1, 1], [], []>} : vector<16x16xf32>, vector<16x16xf32>, vector<16x16xf32> -> vector<16x16xf32>
    %117 = tpu.concatenate %99, %116 in 1 : vector<16x16xf32>, vector<16x16xf32> -> vector<16x32xf32>
    %118 = vector.extract_strided_slice %54 {offsets = [0, 96], sizes = [32, 32], strides = [1, 1]} : vector<32x128xf32> to vector<32x32xf32>
    %cst_37 = arith.constant dense<0.000000e+00> : vector<16x32xf32>
    %119 = tpu.matmul %117, %118, %cst_37 {dimension_numbers = #tpu.dot_dimension_numbers<[1], [0], [0], [1], [0, 0, 1, 1], [], []>} : vector<16x32xf32>, vector<32x32xf32>, vector<16x32xf32> -> vector<16x32xf32>
    %120 = arith.addf %23, %119 : vector<16x32xf32>
    %121 = vector.extract_strided_slice %55 {offsets = [0, 96], sizes = [1, 32], strides = [1, 1]} : vector<1x128xf32> to vector<1x32xf32>
    %122 = vector.broadcast %121 : vector<1x32xf32> to vector<16x32xf32>
    %123 = arith.addf %120, %122 : vector<16x32xf32>
    %cst_38 = arith.constant dense<0.000000e+00> : vector<16xf32>
    %124 = vector.multi_reduction <add>, %123, %cst_38 [1] : vector<16x32xf32> to vector<16xf32>
    %125 = vector.shape_cast %124 : vector<16xf32> to vector<16x1xf32>
    %cst_39 = arith.constant 3.200000e+01 : f32
    %126 = vector.broadcast %cst_39 : f32 to vector<16x1xf32>
    %127 = arith.divf %125, %126 : vector<16x1xf32>
    %128 = vector.broadcast %127 : vector<16x1xf32> to vector<16x32xf32>
    %129 = arith.subf %123, %128 : vector<16x32xf32>
    %130 = arith.mulf %129, %129 : vector<16x32xf32>
    %cst_40 = arith.constant dense<0.000000e+00> : vector<16xf32>
    %131 = vector.multi_reduction <add>, %130, %cst_40 [1] : vector<16x32xf32> to vector<16xf32>
    %132 = vector.shape_cast %131 : vector<16xf32> to vector<16x1xf32>
    %cst_41 = arith.constant 3.200000e+01 : f32
    %133 = vector.broadcast %cst_41 : f32 to vector<16x1xf32>
    %134 = arith.divf %132, %133 : vector<16x1xf32>
    %135 = vector.broadcast %127 : vector<16x1xf32> to vector<16x32xf32>
    %136 = arith.subf %123, %135 : vector<16x32xf32>
    %cst_42 = arith.constant 9.99999974E-6 : f32
    %137 = vector.broadcast %cst_42 : f32 to vector<16x1xf32>
    %138 = arith.addf %134, %137 : vector<16x1xf32>
    %139 = math.rsqrt %138 : vector<16x1xf32>
    %140 = vector.broadcast %139 : vector<16x1xf32> to vector<16x32xf32>
    %141 = arith.mulf %136, %140 : vector<16x32xf32>
    %cst_43 = arith.constant dense<0.000000e+00> : vector<16x128xf32>
    %142 = tpu.matmul %141, %56, %cst_43 {dimension_numbers = #tpu.dot_dimension_numbers<[1], [0], [0], [1], [0, 0, 1, 1], [], []>} : vector<16x32xf32>, vector<32x128xf32>, vector<16x128xf32> -> vector<16x128xf32>
    %143 = vector.broadcast %57 : vector<1x128xf32> to vector<16x128xf32>
    %144 = arith.addf %142, %143 : vector<16x128xf32>
    %cst_44 = arith.constant 5.000000e-01 : f32
    %145 = vector.broadcast %cst_44 : f32 to vector<16x128xf32>
    %146 = arith.mulf %145, %144 : vector<16x128xf32>
    %cst_45 = arith.constant 2.000000e+00 : f32
    %147 = math.sqrt %cst_45 : f32
    %148 = vector.broadcast %147 : f32 to vector<16x128xf32>
    %149 = arith.divf %144, %148 : vector<16x128xf32>
    %150 = math.erf %149 : vector<16x128xf32>
    %cst_46 = arith.constant 1.000000e+00 : f32
    %151 = vector.broadcast %cst_46 : f32 to vector<16x128xf32>
    %152 = arith.addf %151, %150 : vector<16x128xf32>
    %153 = arith.mulf %146, %152 : vector<16x128xf32>
    %cst_47 = arith.constant dense<0.000000e+00> : vector<16x32xf32>
    %154 = tpu.matmul %153, %58, %cst_47 {dimension_numbers = #tpu.dot_dimension_numbers<[1], [0], [0], [1], [0, 0, 1, 1], [], []>} : vector<16x128xf32>, vector<128x32xf32>, vector<16x32xf32> -> vector<16x32xf32>
    %155 = arith.addf %123, %154 : vector<16x32xf32>
    %156 = vector.broadcast %59 : vector<1x32xf32> to vector<16x32xf32>
    %157 = arith.addf %155, %156 : vector<16x32xf32>
    %c256 = arith.constant 256 : index
    %c0_48 = arith.constant 0 : index
    %158 = vector.load %arg2[%c256, %c0_48] : memref<512x128xf32, #tpu.memory_space<vmem>>, vector<32x128xf32>
    %c288 = arith.constant 288 : index
    %c0_49 = arith.constant 0 : index
    %159 = vector.load %arg2[%c288, %c0_49] : memref<512x128xf32, #tpu.memory_space<vmem>>, vector<1x128xf32>
    %c296 = arith.constant 296 : index
    %c0_50 = arith.constant 0 : index
    %160 = vector.load %arg2[%c296, %c0_50] : memref<512x128xf32, #tpu.memory_space<vmem>>, vector<32x128xf32>
    %c328 = arith.constant 328 : index
    %c0_51 = arith.constant 0 : index
    %161 = vector.load %arg2[%c328, %c0_51] : memref<512x128xf32, #tpu.memory_space<vmem>>, vector<1x128xf32>
    %c336 = arith.constant 336 : index
    %c0_52 = arith.constant 0 : index
    %162 = vector.load %arg2[%c336, %c0_52] : memref<512x128xf32, #tpu.memory_space<vmem>>, vector<128x32xf32>
    %c464 = arith.constant 464 : index
    %c0_53 = arith.constant 0 : index
    %163 = vector.load %arg2[%c464, %c0_53] : memref<512x128xf32, #tpu.memory_space<vmem>>, vector<1x32xf32>
    %cst_54 = arith.constant dense<0.000000e+00> : vector<16xf32>
    %164 = vector.multi_reduction <add>, %157, %cst_54 [1] : vector<16x32xf32> to vector<16xf32>
    %165 = vector.shape_cast %164 : vector<16xf32> to vector<16x1xf32>
    %cst_55 = arith.constant 3.200000e+01 : f32
    %166 = vector.broadcast %cst_55 : f32 to vector<16x1xf32>
    %167 = arith.divf %165, %166 : vector<16x1xf32>
    %168 = vector.broadcast %167 : vector<16x1xf32> to vector<16x32xf32>
    %169 = arith.subf %157, %168 : vector<16x32xf32>
    %170 = arith.mulf %169, %169 : vector<16x32xf32>
    %cst_56 = arith.constant dense<0.000000e+00> : vector<16xf32>
    %171 = vector.multi_reduction <add>, %170, %cst_56 [1] : vector<16x32xf32> to vector<16xf32>
    %172 = vector.shape_cast %171 : vector<16xf32> to vector<16x1xf32>
    %cst_57 = arith.constant 3.200000e+01 : f32
    %173 = vector.broadcast %cst_57 : f32 to vector<16x1xf32>
    %174 = arith.divf %172, %173 : vector<16x1xf32>
    %175 = vector.broadcast %167 : vector<16x1xf32> to vector<16x32xf32>
    %176 = arith.subf %157, %175 : vector<16x32xf32>
    %cst_58 = arith.constant 9.99999974E-6 : f32
    %177 = vector.broadcast %cst_58 : f32 to vector<16x1xf32>
    %178 = arith.addf %174, %177 : vector<16x1xf32>
    %179 = math.rsqrt %178 : vector<16x1xf32>
    %180 = vector.broadcast %179 : vector<16x1xf32> to vector<16x32xf32>
    %181 = arith.mulf %176, %180 : vector<16x32xf32>
    %182 = vector.extract_strided_slice %158 {offsets = [0, 0], sizes = [32, 96], strides = [1, 1]} : vector<32x128xf32> to vector<32x96xf32>
    %cst_59 = arith.constant dense<0.000000e+00> : vector<16x96xf32>
    %183 = tpu.matmul %181, %182, %cst_59 {dimension_numbers = #tpu.dot_dimension_numbers<[1], [0], [0], [1], [0, 0, 1, 1], [], []>} : vector<16x32xf32>, vector<32x96xf32>, vector<16x96xf32> -> vector<16x96xf32>
    %184 = vector.extract_strided_slice %159 {offsets = [0, 0], sizes = [1, 96], strides = [1, 1]} : vector<1x128xf32> to vector<1x96xf32>
    %185 = vector.broadcast %184 : vector<1x96xf32> to vector<16x96xf32>
    %186 = arith.addf %183, %185 : vector<16x96xf32>
    %187 = vector.extract_strided_slice %186 {offsets = [0, 0], sizes = [16, 16], strides = [1, 1]} : vector<16x96xf32> to vector<16x16xf32>
    %188 = vector.extract_strided_slice %186 {offsets = [0, 32], sizes = [16, 16], strides = [1, 1]} : vector<16x96xf32> to vector<16x16xf32>
    %189 = vector.extract_strided_slice %186 {offsets = [0, 64], sizes = [16, 16], strides = [1, 1]} : vector<16x96xf32> to vector<16x16xf32>
    %190 = tpu.transpose %188, [1, 0] : vector<16x16xf32> -> vector<16x16xf32>
    %cst_60 = arith.constant dense<0.000000e+00> : vector<16x16xf32>
    %191 = tpu.matmul %187, %190, %cst_60 {dimension_numbers = #tpu.dot_dimension_numbers<[1], [0], [0], [1], [0, 0, 1, 1], [], []>} : vector<16x16xf32>, vector<16x16xf32>, vector<16x16xf32> -> vector<16x16xf32>
    %192 = arith.addf %191, %53 : vector<16x16xf32>
    %cst_61 = arith.constant dense<0xFF800000> : vector<16xf32>
    %193 = vector.multi_reduction <maximumf>, %192, %cst_61 [1] : vector<16x16xf32> to vector<16xf32>
    %194 = vector.shape_cast %193 : vector<16xf32> to vector<16x1xf32>
    %195 = vector.broadcast %194 : vector<16x1xf32> to vector<16x16xf32>
    %196 = arith.subf %192, %195 : vector<16x16xf32>
    %197 = math.exp %196 : vector<16x16xf32>
    %cst_62 = arith.constant dense<0.000000e+00> : vector<16xf32>
    %198 = vector.multi_reduction <add>, %197, %cst_62 [1] : vector<16x16xf32> to vector<16xf32>
    %199 = vector.shape_cast %198 : vector<16xf32> to vector<16x1xf32>
    %200 = tpu.reciprocal %199 {approx = true} : vector<16x1xf32> -> vector<16x1xf32>
    %201 = vector.broadcast %200 : vector<16x1xf32> to vector<16x16xf32>
    %202 = arith.mulf %197, %201 : vector<16x16xf32>
    %cst_63 = arith.constant dense<0.000000e+00> : vector<16x16xf32>
    %203 = tpu.matmul %202, %189, %cst_63 {dimension_numbers = #tpu.dot_dimension_numbers<[1], [0], [0], [1], [0, 0, 1, 1], [], []>} : vector<16x16xf32>, vector<16x16xf32>, vector<16x16xf32> -> vector<16x16xf32>
    %204 = vector.extract_strided_slice %186 {offsets = [0, 16], sizes = [16, 16], strides = [1, 1]} : vector<16x96xf32> to vector<16x16xf32>
    %205 = vector.extract_strided_slice %186 {offsets = [0, 48], sizes = [16, 16], strides = [1, 1]} : vector<16x96xf32> to vector<16x16xf32>
    %206 = vector.extract_strided_slice %186 {offsets = [0, 80], sizes = [16, 16], strides = [1, 1]} : vector<16x96xf32> to vector<16x16xf32>
    %207 = tpu.transpose %205, [1, 0] : vector<16x16xf32> -> vector<16x16xf32>
    %cst_64 = arith.constant dense<0.000000e+00> : vector<16x16xf32>
    %208 = tpu.matmul %204, %207, %cst_64 {dimension_numbers = #tpu.dot_dimension_numbers<[1], [0], [0], [1], [0, 0, 1, 1], [], []>} : vector<16x16xf32>, vector<16x16xf32>, vector<16x16xf32> -> vector<16x16xf32>
    %209 = arith.addf %208, %53 : vector<16x16xf32>
    %cst_65 = arith.constant dense<0xFF800000> : vector<16xf32>
    %210 = vector.multi_reduction <maximumf>, %209, %cst_65 [1] : vector<16x16xf32> to vector<16xf32>
    %211 = vector.shape_cast %210 : vector<16xf32> to vector<16x1xf32>
    %212 = vector.broadcast %211 : vector<16x1xf32> to vector<16x16xf32>
    %213 = arith.subf %209, %212 : vector<16x16xf32>
    %214 = math.exp %213 : vector<16x16xf32>
    %cst_66 = arith.constant dense<0.000000e+00> : vector<16xf32>
    %215 = vector.multi_reduction <add>, %214, %cst_66 [1] : vector<16x16xf32> to vector<16xf32>
    %216 = vector.shape_cast %215 : vector<16xf32> to vector<16x1xf32>
    %217 = tpu.reciprocal %216 {approx = true} : vector<16x1xf32> -> vector<16x1xf32>
    %218 = vector.broadcast %217 : vector<16x1xf32> to vector<16x16xf32>
    %219 = arith.mulf %214, %218 : vector<16x16xf32>
    %cst_67 = arith.constant dense<0.000000e+00> : vector<16x16xf32>
    %220 = tpu.matmul %219, %206, %cst_67 {dimension_numbers = #tpu.dot_dimension_numbers<[1], [0], [0], [1], [0, 0, 1, 1], [], []>} : vector<16x16xf32>, vector<16x16xf32>, vector<16x16xf32> -> vector<16x16xf32>
    %221 = tpu.concatenate %203, %220 in 1 : vector<16x16xf32>, vector<16x16xf32> -> vector<16x32xf32>
    %222 = vector.extract_strided_slice %158 {offsets = [0, 96], sizes = [32, 32], strides = [1, 1]} : vector<32x128xf32> to vector<32x32xf32>
    %cst_68 = arith.constant dense<0.000000e+00> : vector<16x32xf32>
    %223 = tpu.matmul %221, %222, %cst_68 {dimension_numbers = #tpu.dot_dimension_numbers<[1], [0], [0], [1], [0, 0, 1, 1], [], []>} : vector<16x32xf32>, vector<32x32xf32>, vector<16x32xf32> -> vector<16x32xf32>
    %224 = arith.addf %157, %223 : vector<16x32xf32>
    %225 = vector.extract_strided_slice %159 {offsets = [0, 96], sizes = [1, 32], strides = [1, 1]} : vector<1x128xf32> to vector<1x32xf32>
    %226 = vector.broadcast %225 : vector<1x32xf32> to vector<16x32xf32>
    %227 = arith.addf %224, %226 : vector<16x32xf32>
    %cst_69 = arith.constant dense<0.000000e+00> : vector<16xf32>
    %228 = vector.multi_reduction <add>, %227, %cst_69 [1] : vector<16x32xf32> to vector<16xf32>
    %229 = vector.shape_cast %228 : vector<16xf32> to vector<16x1xf32>
    %cst_70 = arith.constant 3.200000e+01 : f32
    %230 = vector.broadcast %cst_70 : f32 to vector<16x1xf32>
    %231 = arith.divf %229, %230 : vector<16x1xf32>
    %232 = vector.broadcast %231 : vector<16x1xf32> to vector<16x32xf32>
    %233 = arith.subf %227, %232 : vector<16x32xf32>
    %234 = arith.mulf %233, %233 : vector<16x32xf32>
    %cst_71 = arith.constant dense<0.000000e+00> : vector<16xf32>
    %235 = vector.multi_reduction <add>, %234, %cst_71 [1] : vector<16x32xf32> to vector<16xf32>
    %236 = vector.shape_cast %235 : vector<16xf32> to vector<16x1xf32>
    %cst_72 = arith.constant 3.200000e+01 : f32
    %237 = vector.broadcast %cst_72 : f32 to vector<16x1xf32>
    %238 = arith.divf %236, %237 : vector<16x1xf32>
    %239 = vector.broadcast %231 : vector<16x1xf32> to vector<16x32xf32>
    %240 = arith.subf %227, %239 : vector<16x32xf32>
    %cst_73 = arith.constant 9.99999974E-6 : f32
    %241 = vector.broadcast %cst_73 : f32 to vector<16x1xf32>
    %242 = arith.addf %238, %241 : vector<16x1xf32>
    %243 = math.rsqrt %242 : vector<16x1xf32>
    %244 = vector.broadcast %243 : vector<16x1xf32> to vector<16x32xf32>
    %245 = arith.mulf %240, %244 : vector<16x32xf32>
    %cst_74 = arith.constant dense<0.000000e+00> : vector<16x128xf32>
    %246 = tpu.matmul %245, %160, %cst_74 {dimension_numbers = #tpu.dot_dimension_numbers<[1], [0], [0], [1], [0, 0, 1, 1], [], []>} : vector<16x32xf32>, vector<32x128xf32>, vector<16x128xf32> -> vector<16x128xf32>
    %247 = vector.broadcast %161 : vector<1x128xf32> to vector<16x128xf32>
    %248 = arith.addf %246, %247 : vector<16x128xf32>
    %cst_75 = arith.constant 5.000000e-01 : f32
    %249 = vector.broadcast %cst_75 : f32 to vector<16x128xf32>
    %250 = arith.mulf %249, %248 : vector<16x128xf32>
    %cst_76 = arith.constant 2.000000e+00 : f32
    %251 = math.sqrt %cst_76 : f32
    %252 = vector.broadcast %251 : f32 to vector<16x128xf32>
    %253 = arith.divf %248, %252 : vector<16x128xf32>
    %254 = math.erf %253 : vector<16x128xf32>
    %cst_77 = arith.constant 1.000000e+00 : f32
    %255 = vector.broadcast %cst_77 : f32 to vector<16x128xf32>
    %256 = arith.addf %255, %254 : vector<16x128xf32>
    %257 = arith.mulf %250, %256 : vector<16x128xf32>
    %cst_78 = arith.constant dense<0.000000e+00> : vector<16x32xf32>
    %258 = tpu.matmul %257, %162, %cst_78 {dimension_numbers = #tpu.dot_dimension_numbers<[1], [0], [0], [1], [0, 0, 1, 1], [], []>} : vector<16x128xf32>, vector<128x32xf32>, vector<16x32xf32> -> vector<16x32xf32>
    %259 = arith.addf %227, %258 : vector<16x32xf32>
    %260 = vector.broadcast %163 : vector<1x32xf32> to vector<16x32xf32>
    %261 = arith.addf %259, %260 : vector<16x32xf32>
    %262 = tpu.iota {dimensions = array<i32: 0>} : vector<14x16xi32>
    %263 = tpu.iota {dimensions = array<i32: 1>} : vector<14x16xi32>
    %c0_i32_79 = arith.constant 0 : i32
    %264 = vector.broadcast %c0_i32_79 : i32 to vector<14x16xi32>
    %265 = arith.cmpi sge, %262, %264 : vector<14x16xi32>
    %c7_i32 = arith.constant 7 : i32
    %266 = vector.broadcast %c7_i32 : i32 to vector<14x16xi32>
    %267 = arith.cmpi slt, %262, %266 : vector<14x16xi32>
    %268 = arith.andi %265, %267 : vector<14x16xi1>
    %c1_i32 = arith.constant 1 : i32
    %269 = vector.broadcast %c1_i32 : i32 to vector<14x16xi32>
    %270 = arith.addi %262, %269 : vector<14x16xi32>
    %271 = arith.cmpi eq, %263, %270 : vector<14x16xi32>
    %272 = arith.andi %268, %271 : vector<14x16xi1>
    %c7_i32_80 = arith.constant 7 : i32
    %273 = vector.broadcast %c7_i32_80 : i32 to vector<14x16xi32>
    %274 = arith.cmpi sge, %262, %273 : vector<14x16xi32>
    %c14_i32 = arith.constant 14 : i32
    %275 = vector.broadcast %c14_i32 : i32 to vector<14x16xi32>
    %276 = arith.cmpi slt, %262, %275 : vector<14x16xi32>
    %277 = arith.andi %274, %276 : vector<14x16xi1>
    %c2_i32 = arith.constant 2 : i32
    %278 = vector.broadcast %c2_i32 : i32 to vector<14x16xi32>
    %279 = arith.addi %262, %278 : vector<14x16xi32>
    %280 = arith.cmpi eq, %263, %279 : vector<14x16xi32>
    %281 = arith.andi %277, %280 : vector<14x16xi1>
    %282 = arith.ori %272, %281 : vector<14x16xi1>
    %cst_81 = arith.constant 1.000000e+00 : f32
    %cst_82 = arith.constant 0.000000e+00 : f32
    %283 = vector.broadcast %cst_81 : f32 to vector<14x16xf32>
    %284 = vector.broadcast %cst_82 : f32 to vector<14x16xf32>
    %285 = arith.select %282, %283, %284 : vector<14x16xi1>, vector<14x16xf32>
    %cst_83 = arith.constant dense<0.000000e+00> : vector<14x32xf32>
    %286 = tpu.matmul %285, %261, %cst_83 {dimension_numbers = #tpu.dot_dimension_numbers<[1], [0], [0], [1], [0, 0, 1, 1], [], []>} : vector<14x16xf32>, vector<16x32xf32>, vector<14x32xf32> -> vector<14x32xf32>
    %cst_84 = arith.constant dense<0.000000e+00> : vector<14xf32>
    %287 = vector.multi_reduction <add>, %286, %cst_84 [1] : vector<14x32xf32> to vector<14xf32>
    %288 = vector.shape_cast %287 : vector<14xf32> to vector<14x1xf32>
    %cst_85 = arith.constant 3.200000e+01 : f32
    %289 = vector.broadcast %cst_85 : f32 to vector<14x1xf32>
    %290 = arith.divf %288, %289 : vector<14x1xf32>
    %291 = vector.broadcast %290 : vector<14x1xf32> to vector<14x32xf32>
    %292 = arith.subf %286, %291 : vector<14x32xf32>
    %293 = arith.mulf %292, %292 : vector<14x32xf32>
    %cst_86 = arith.constant dense<0.000000e+00> : vector<14xf32>
    %294 = vector.multi_reduction <add>, %293, %cst_86 [1] : vector<14x32xf32> to vector<14xf32>
    %295 = vector.shape_cast %294 : vector<14xf32> to vector<14x1xf32>
    %cst_87 = arith.constant 3.200000e+01 : f32
    %296 = vector.broadcast %cst_87 : f32 to vector<14x1xf32>
    %297 = arith.divf %295, %296 : vector<14x1xf32>
    %298 = vector.broadcast %290 : vector<14x1xf32> to vector<14x32xf32>
    %299 = arith.subf %286, %298 : vector<14x32xf32>
    %cst_88 = arith.constant 9.99999974E-6 : f32
    %300 = vector.broadcast %cst_88 : f32 to vector<14x1xf32>
    %301 = arith.addf %297, %300 : vector<14x1xf32>
    %302 = math.rsqrt %301 : vector<14x1xf32>
    %303 = vector.broadcast %302 : vector<14x1xf32> to vector<14x32xf32>
    %304 = arith.mulf %299, %303 : vector<14x32xf32>
    %c472 = arith.constant 472 : index
    %c0_89 = arith.constant 0 : index
    %305 = vector.load %arg2[%c472, %c0_89] : memref<512x128xf32, #tpu.memory_space<vmem>>, vector<32x128xf32>
    %c504 = arith.constant 504 : index
    %c0_90 = arith.constant 0 : index
    %306 = vector.load %arg2[%c504, %c0_90] : memref<512x128xf32, #tpu.memory_space<vmem>>, vector<1x128xf32>
    %cst_91 = arith.constant dense<0.000000e+00> : vector<14x128xf32>
    %307 = tpu.matmul %304, %305, %cst_91 {dimension_numbers = #tpu.dot_dimension_numbers<[1], [0], [0], [1], [0, 0, 1, 1], [], []>} : vector<14x32xf32>, vector<32x128xf32>, vector<14x128xf32> -> vector<14x128xf32>
    %308 = vector.broadcast %306 : vector<1x128xf32> to vector<14x128xf32>
    %309 = arith.addf %307, %308 : vector<14x128xf32>
    %c0_92 = arith.constant 0 : index
    %c0_93 = arith.constant 0 : index
    %310 = vector.load %arg3[%c0_92, %c0_93] : memref<14x128xf32, #tpu.memory_space<vmem>>, vector<14x128xf32>
    tpu.vector_store %arg3[%c0_92, %c0_93], %309 {strides = array<i32>} : memref<14x128xf32, #tpu.memory_space<vmem>>, vector<14x128xf32>,
    return
  }
}

</mosaic_0001>

<bundles_post_ra>
// kernel: tpu_custom_call.1
= control target key start
LH: loop header
LB: loop body
LE: loop exit
PB: predicated region body
PF: predicated region fallthrough
CT: control target
= control target key end

     0   :  { %8 = vsyncpa [#allocation3], 0  ;;  %s2044_s0 = inlined_call_operand.vmem [shape: s32[16,3], index: 0, kind: input, shape index: {}]   ;;  %s2045_s1 = inlined_call_operand.vmem [shape: f32[2,32], index: 1, kind: input, shape index: {}]   ;;  %s2046_s2 = inlined_call_operand.hbm [shape: f32[512,128], index: 2, kind: input, shape index: {}]   ;;  %s2047_s3 = inlined_call_operand.hbm [shape: f32[14,128], index: 3, kind: output, shape index: {}]  }
   0x1   :  { %9 = vsyncpa [#allocation4], 0  ;;  %s18_s14 = sshll.u32 %s2046_s2, 4  ;;  %s1675_s15 = smov [#allocation2]   ;;  %s19_s14 = int_to_ptr.hbm [resolvable:$true] %s18_s14 }
   0x2   :  { %s20_s16 = sshll.u32 %s1675_s15, 4  ;;  %s1676_s17 = smov 128   ;;  %s21_s16 = int_to_ptr.vmem [resolvable:$true] %s20_s16 }
   0x3   :  { %s1677_s18 = smov 8  }
   0x4   :  { %26 = dma.hbm_to_vmem [thread:$0]  %s19_s14, 8192, %s21_s16, [#allocation3], %s1676_s17, %s1676_s17, %s1677_s18  }
   0x5   :  { %1671 = dma.done.wait [#allocation3], 8192  }
   0x6   :  { %1672 = vsyncadd [#allocation3], 4294959104  ;;  %v1678_v0 = vmov 2   ;;  %v1679_v1 = vmov 1   ;;  %v1680_v2 = vmov 0   ;;  %v32_v3 = vld [vmem:[%s2044_s0 + $0x8] sm:$0xff]  ;;  %v33_v11 = vlaneseq }
   0x7   :  { %1505 = vset.pattern.permute.xlu0 %v1678_v0  ;;  %1507 = vset.pattern.permute.xlu1 %v1679_v1  ;;  %v31_v4 = vld [vmem:[%s2044_s0] sm:$0xff]  ;;  %vm78_vm0 = vcmask 1041408   ;;  %vm112_vm1 = vcmask 1040384   ;;  %v58_v7 = vld [vmem:[#allocation2 + $0x18] sm:$0xff]  ;;  %v57_v8 = vld [vmem:[#allocation2 + $0x10] sm:$0xff]  ;;  %vm71_vm2 = vcmask 15360  }
   0x8   :  { %1509 = vset.pattern.permute.xlu2 %v1680_v2  ;;  %64 = vperm.xlu0 %1505, %v32_v3   ;;  %v70_v5 = vld [vmem:[%s2045_s1] sm:$0x3]  ;;  %v56_v9 = vld [vmem:[#allocation2 + $0x8] sm:$0xff]  ;;  %v1729_v12 = vand.u32 127, %v33_v11  ;;  %v1681_v16 = vmov 0.0   ;;  %vm105_vm7 = vcmask 269312  }
   0x9   :  { %44 = vperm.xlu1 %1507, %v31_v4   ;;  %39 = vperm.xlu2 %1509, %v32_v3   ;;  %v59_v6 = vld [vmem:[#allocation2 + $0x20] sm:$0x1]  ;;  %vm201_vm12 = vcmask 261120   ;;  %v1682_v32 = vmov 32.0   ;;  %v1762_v50 = vld [vmem:[#allocation2 + $0x38] sm:$0xff]  ;;  %v1765_v51 = vld [vmem:[#allocation2 + $0x30] sm:$0xff] }
   0xa   :  { %1484 = vmatpush.msk.msra.mxu1 %vm78_vm0, %v70_v5  ;;  %1434 = vmatpush.msk.msra.mxu0 %vm78_vm0, %v70_v5  ;;  %v55_v10 = vld [vmem:[#allocation2] sm:$0xff]  ;;  %1559 = vrcp.f32 %v1682_v32  ;;  %v1768_v52 = vld [vmem:[#allocation2 + $0x28] sm:$0xff]  ;;  %s1683_s0 = smov 96   ;;  %s1684_s1 = smov 80  }
   0xb   :  { %v1759_v49 = vld [vmem:[#allocation2 + $0x40] sm:$0xff]  ;;  %v1526_v54 = vpack.i.bf16 %v1768_v52, %v1765_v51  ;;  %s1685_s24 = smov 112   ;;  %s1687_s25 = smov 48  }
   0xc   :  { %1437 = vmatpush.msk.msrb.mxu1 %vm112_vm1, %v59_v6  ;;  %272 = vmatpush.msra.mxu2 %v1759_v49  ;;  %v1521_v53 = vpack.i.bf16 %v1762_v50, %v1759_v49  ;;  %s1688_s26 = smov 64   ;;  %s1689_s27 = smov 32  }
   0xd   :  { %s1690_s28 = smov 16   ;;  %s1692_s29 = smov [#allocation5]  }
   0xe   :  { %128 = vmatpush.msrb.mxu1 %v58_v7  ;;  %273 = vmatpush.msra.mxu2 %v1762_v50  ;;  %s1419_s30 = sshll.u32 %s1692_s29, 4  ;;  %s1421_s6 = sshll.u32 %s2047_s3, 4  ;;  %s1420_s30 = int_to_ptr.vmem [resolvable:$true] %s1419_s30  ;;  %s1422_s6 = int_to_ptr.hbm [resolvable:$true] %s1421_s6 }
  0x10   :  { %1506 = vset.pattern.permute.xlu0 %v1680_v2  ;;  %129 = vmatpush.msrb.mxu1 %v57_v8  ;;  %v1560_v33 = vpop.eup %1559 }
  0x11   :  { %1508 = vset.pattern.permute.xlu1 %v1678_v0  ;;  %36 = vperm.xlu0 %1506, %v31_v4   ;;  %v209_v34 = vmul.f32 32.0, %v1560_v33  ;;  %vm213_vm13 = vweird.f32 %v1560_v33 }
  0x12   :  { %61 = vperm.xlu1 %1508, %v31_v4   ;;  %1510 = vset.pattern.permute.xlu2 %v1679_v1 }
  0x13   :  { %47 = vperm.xlu2 %1510, %v32_v3   ;;  %130 = vmatpush.msrb.mxu1 %v56_v9  ;;  %v210_v35 = vsub.f32 1.0, %v209_v34 }
  0x14   :  { %274 = vmatpush.msra.mxu2 %v1765_v51 }
  0x15   :  { %131 = vmatpush.msrb.mxu1 %v55_v10  ;;  %v211_v36 = vmul.f32 %v1560_v33, %v210_v35 }
  0x16   :  { %275 = vmatpush.msra.mxu2 %v1768_v52 }
  0x17   :  { %v212_v37 = vadd.f32 %v1560_v33, %v211_v36 }
  0x19   :  { %1551 = vset.pattern.permute.xlu0 %v1678_v0  ;;  %v1751_v38 = vsel %vm213_vm13, %v1560_v33, %v212_v37 }
  0x63   :  { %v40_v15 = vpop.permute.xlu2 %39 }
  0x64   :  { %vm42_vm9 = vcmp.eq.s32.totalorder %v1729_v12, %v40_v15  ;;  %v1779_v15 = vld [vmem:[#allocation2 + $0x48] ss:$0 sm:$0xff] }
  0x6d   :  { %v48_v20 = vpop.permute.xlu2 %47 }
  0x6e   :  { %vm50_vm10 = vcmp.eq.s32.totalorder %v1729_v12, %v48_v20 }
  0x6f   :  { %vm52_vm11 = vmor %vm42_vm9, %vm50_vm10  ;;  %vm163_vm9 = vcmp.lt.s32.totalorder %v1729_v12, 16 }
  0x70   :  { %v54_v23 = vsel %vm52_vm11, 1.0, %v1681_v16 }
  0x7a   :  { %v65_v13 = vpop.permute.xlu0 %64 }
  0x7b   :  { %v45_v14 = vpop.permute.xlu1 %44  ;;  %vm67_vm3 = vcmp.eq.s32.totalorder %v1729_v12, %v65_v13 }
  0x7c   :  { %v69_v17 = vsel %vm67_vm3, 1.0, %v1681_v16  ;;  %vm49_vm4 = vcmp.eq.s32.totalorder %v1729_v12, %v45_v14 }
  0x7d   :  { %1436 = vmatmul.msk.f32.vlgmr.msra.gmra.mxu1 %vm71_vm2, %v69_v17 }
  0x83   :  { %v37_v18 = vpop.permute.xlu0 %36 }
  0x84   :  { %v62_v19 = vpop.permute.xlu1 %61  ;;  %vm41_vm5 = vcmp.eq.s32.totalorder %v1729_v12, %v37_v18 }
  0x85   :  { %vm66_vm6 = vcmp.eq.s32.totalorder %v1729_v12, %v62_v19  ;;  %vm51_vm8 = vmor %vm41_vm5, %vm49_vm4  ;;  %vm289_vm4 = vcmask 130048   ;;  %vm151_vm5 = vcmp.lt.s32.totalorder %v1729_v12, 8 }
  0x86   :  { %v68_v21 = vsel %vm66_vm6, 1.0, %v1681_v16  ;;  %v53_v22 = vsel %vm51_vm8, 1.0, %v1681_v16  ;;  %vm160_vm8 = vcmp.ge.s32.totalorder %v1729_v12, 8 }
  0x87   :  { %1435 = vmatmul.msk.f32.vlgmr.msra.gmra.mxu0 %vm71_vm2, %v68_v21  ;;  %1438 = vmatmul.msk.f32.vlgmr.msrb.gmra.mxu1 %vm105_vm7, %v53_v22  ;;  %vm165_vm10 = vmand %vm160_vm8, %vm163_vm9 }
  0x8f   :  { %1439 = vmatmul.msk.f32.gmra.mxu1 %vm105_vm7, %v54_v23 }
  0xfa   :  { %v102_v24 = vpop.f32.mrf.mxu1 }
 0x104   :  { %v99_v25 = vpop.f32.mrf.mxu0  ;;  %v133_v26 = vpop.f32.mrf.mxu1 }
 0x105   :  { %v1743_v27 = vadd.f32 %v133_v26, %v99_v25 }
 0x107   :  { %v202_v28 = vsel %vm201_vm12, %v1743_v27, 0.0 }
 0x108   :  { %203 = vadd.xlane.f32.xlu1 %v202_v28  ;;  %v1800_v28 = vshrl.u32 %v33_v11, 7 }
 0x10a   :  { %vm168_vm6 = vcmp.le.s32.totalorder %v1729_v12, %v1800_v28  ;;  %v1810_v35 = vadd.s32 8, %v1800_v28 }
 0x10b   :  { %vm170_vm7 = vmand %vm168_vm6, %vm151_vm5 }
 0x10c   :  { %v136_v29 = vpop.f32.mrf.mxu1  ;;  %vm169_vm11 = vcmp.le.s32.totalorder %v1729_v12, %v1810_v35 }
 0x10d   :  { %v1747_v30 = vadd.f32 %v136_v29, %v102_v24  ;;  %v1686_v29 = vmov -1e+30   ;;  %vm171_vm13 = vmand %vm169_vm11, %vm165_vm10 }
 0x10f   :  { %v205_v31 = vsel %vm201_vm12, %v1747_v30, 0.0 }
 0x110   :  { %206 = vadd.xlane.f32.xlu2 %v205_v31  ;;  %v1805_v31 = vsel %vm170_vm7, 0.0, %v1686_v29 }
 0x17b   :  { %v204_v39 = vpop.xlane.xlu1 %203 }
 0x17c   :  { %v215_v40 = vmul.f32 %v1751_v38, %v204_v39  ;;  %v1818_v39 = vsel %vm171_vm13, 0.0, %v1686_v29 }
 0x17e   :  { %v217_v41 = vsub.f32 %v1743_v27, %v215_v40 }
 0x180   :  { %v219_v42 = vmul.f32 %v217_v41, %v217_v41 }
 0x182   :  { %v221_v43 = vsel %vm201_vm12, %v219_v42, 0.0 }
 0x183   :  { %v207_v44 = vpop.xlane.xlu2 %206  ;;  %222 = vadd.xlane.f32.xlu0 %v221_v43 }
 0x184   :  { %v216_v45 = vmul.f32 %v1751_v38, %v207_v44 }
 0x186   :  { %v218_v46 = vsub.f32 %v1747_v30, %v216_v45 }
 0x188   :  { %v220_v47 = vmul.f32 %v218_v46, %v218_v46 }
 0x18a   :  { %v224_v48 = vsel %vm201_vm12, %v220_v47, 0.0 }
 0x18b   :  { %225 = vadd.xlane.f32.xlu2 %v224_v48 }
 0x1f6   :  { %v223_v55 = vpop.xlane.xlu0 %222 }
 0x1f7   :  { %v227_v56 = vmul.f32 %v223_v55, %v1751_v38 }
 0x1f9   :  { %v229_v57 = vadd.f32 1e-05, %v227_v56 }
 0x1fb   :  { %1561 = vrsqrt.f32 %v229_v57  ;;  %vm237_vm15 = vweird.f32 %v229_v57 }
 0x1fe   :  { %v226_v58 = vpop.xlane.xlu2 %225 }
 0x1ff   :  { %v228_v59 = vmul.f32 %v226_v58, %v1751_v38 }
 0x201   :  { %v1562_v60 = vpop.eup %1561  ;;  %v230_v61 = vadd.f32 1e-05, %v228_v59 }
 0x202   :  { %v232_v62 = vmul.f32 %v1562_v60, %v229_v57  ;;  %vm238_vm14 = vweird.f32 %v1562_v60 }
 0x203   :  { %1563 = vrsqrt.f32 %v230_v61  ;;  %vm239_vm0 = vmor %vm237_vm15, %vm238_vm14  ;;  %vm247_vm2 = vweird.f32 %v230_v61 }
 0x204   :  { %v233_v63 = vmul.f32 %v1562_v60, %v232_v62 }
 0x206   :  { %v234_v0 = vmul.f32 0.5, %v233_v63 }
 0x208   :  { %v235_v1 = vsub.f32 1.5, %v234_v0 }
 0x209   :  { %v1564_v2 = vpop.eup %1563 }
 0x20a   :  { %v242_v3 = vmul.f32 %v1564_v2, %v230_v61  ;;  %v236_v4 = vmul.f32 %v1562_v60, %v235_v1  ;;  %vm248_vm1 = vweird.f32 %v1564_v2 }
 0x20b   :  { %vm249_vm3 = vmor %vm247_vm2, %vm248_vm1 }
 0x20c   :  { %v243_v5 = vmul.f32 %v1564_v2, %v242_v3  ;;  %v240_v6 = vsel %vm239_vm0, %v1562_v60, %v236_v4 }
 0x20d   :  { %v251_v7 = vmul.f32 %v240_v6, %v217_v41 }
 0x20e   :  { %v244_v8 = vmul.f32 0.5, %v243_v5 }
 0x20f   :  { %1440 = vmatmul.msk.f32.vlgmr.msra.gmra.mxu2 %vm201_vm12, %v251_v7 }
 0x210   :  { %v245_v9 = vsub.f32 1.5, %v244_v8 }
 0x212   :  { %v246_v10 = vmul.f32 %v1564_v2, %v245_v9 }
 0x214   :  { %v250_v13 = vsel %vm249_vm3, %v1564_v2, %v246_v10 }
 0x215   :  { %v252_v14 = vmul.f32 %v250_v13, %v218_v46 }
 0x217   :  { %1441 = vmatmul.msk.f32.gmra.mxu2 %vm201_vm12, %v252_v14 }
 0x292   :  { %v277_v17 = vpop.f32.mrf.mxu2 }
 0x293   :  { %v278_v18 = vadd.f32 %v1779_v15, %v277_v17 }
 0x295   :  { %285 = vrot.lane.b32.xlu2 %v278_v18, %s1683_s0 }
 0x29a   :  { %v280_v19 = vpop.f32.mrf.mxu2 }
 0x29b   :  { %v281_v20 = vadd.f32 %v1779_v15, %v280_v19 }
 0x29d   :  { %384 = vrot.lane.b32.xlu0 %v281_v20, %s1684_s1  ;;  %287 = vrot.lane.b32.xlu1 %v281_v20, %s1683_s0  ;;  %v1511_v45 = vpack.i.bf16 %v278_v18, %v281_v20 }
 0x29e   :  { %380 = vrot.lane.b32.xlu2 %v281_v20, %s1685_s24 }
 0x2a5   :  { %378 = vrot.lane.b32.xlu0 %v278_v18, %s1685_s24  ;;  %382 = vrot.lane.b32.xlu1 %v278_v18, %s1684_s1 }
 0x2ef   :  { %v286_v22 = vpop.permute.xlu2 %285 }
 0x2f8   :  { %v381_v26 = vpop.permute.xlu2 %380 }
 0x30f   :  { %v288_v21 = vpop.permute.xlu1 %287  ;;  %v385_v23 = vpop.permute.xlu0 %384 }
 0x310   :  { %1442 = vmatpush.xpose.msk.msrb.mxu2 %vm289_vm4, %v288_v21  ;;  %1485 = vmatpush.xpose.msk.msra.mxu3 %vm289_vm4, %v288_v21 }
 0x314   :  { %1443 = vmatpush.xpose.msk.msrb.mxu2 %vm289_vm4, %v286_v22  ;;  %1486 = vmatpush.xpose.msk.msra.mxu3 %vm289_vm4, %v286_v22 }
 0x317   :  { %v383_v24 = vpop.permute.xlu1 %382  ;;  %1444 = vmatmul.msk.f32.vlgmr.msrb.gmra.mxu2 %vm289_vm4, %v278_v18  ;;  %1445 = vmatmul.msk.f32.vlgmr.msra.gmra.mxu3 %vm289_vm4, %v281_v20  ;;  %v379_v25 = vpop.permute.xlu0 %378 }
 0x318   :  { %1448 = vmatpush.xpose.msk.msra.mxu2 %vm289_vm4, %v385_v23 }
 0x31c   :  { %1449 = vmatpush.xpose.msk.msra.mxu2 %vm289_vm4, %v383_v24 }
 0x31f   :  { %1450 = vmatmul.msk.f32.vlgmr.msra.gmra.mxu2 %vm289_vm4, %v379_v25 }
 0x327   :  { %1451 = vmatmul.msk.f32.gmra.mxu2 %vm289_vm4, %v381_v26 }
 0x39a   :  { %v315_v32 = vpop.f32.mrf.mxu2  ;;  %v318_v43 = vpop.f32.mrf.mxu3 }
 0x39b   :  { %v316_v33 = vadd.f32 %v315_v32, %v1805_v31  ;;  %v319_v44 = vadd.f32 %v318_v43, %v1818_v39 }
 0x39d   :  { %v321_v34 = vsel %vm289_vm4, %v316_v33, -inf  ;;  %v324_v46 = vsel %vm289_vm4, %v319_v44, -inf }
 0x39e   :  { %322 = vmax.xlane.f32.xlu2 %v321_v34 }
 0x3a2   :  { %v411_v11 = vpop.f32.mrf.mxu2 }
 0x3a3   :  { %v412_v36 = vadd.f32 %v411_v11, %v1805_v31 }
 0x3a5   :  { %v417_v37 = vsel %vm289_vm4, %v412_v36, -inf }
 0x3a6   :  { %418 = vmax.xlane.f32.xlu1 %v417_v37 }
 0x3aa   :  { %v414_v40 = vpop.f32.mrf.mxu2 }
 0x3ab   :  { %v415_v41 = vadd.f32 %v414_v40, %v1818_v39 }
 0x3ad   :  { %v420_v42 = vsel %vm289_vm4, %v415_v41, -inf }
 0x3ae   :  { %421 = vmax.xlane.f32.xlu0 %v420_v42 }
 0x3b6   :  { %1512 = vrot.lane.b32.xlu2 %v1511_v45, %s1687_s25  ;;  %325 = vmax.xlane.f32.xlu0 %v324_v46 }
 0x3be   :  { %1527 = vrot.lane.b32.xlu2 %v1526_v54, %s1689_s27 }
 0x411   :  { %v323_v47 = vpop.xlane.xlu2 %322 }
 0x412   :  { %v327_v48 = vsub.f32 %v316_v33, %v323_v47 }
 0x414   :  { %v329_v55 = vmul.f32 1.442695, %v327_v48 }
 0x416   :  { %1565 = vpow2.f32 %v329_v55 }
 0x419   :  { %v419_v56 = vpop.xlane.xlu1 %418  ;;  %v1513_v57 = vpop.permute.xlu2 %1512 }
 0x41a   :  { %v423_v58 = vsub.f32 %v412_v36, %v419_v56  ;;  %v1514_v59 = vunpack.i.l.bf16 %v1513_v57  ;;  %v1515_v62 = vunpack.i.h.bf16 %v1513_v57 }
 0x41c   :  { %v1566_v60 = vpop.eup %1565  ;;  %v425_v61 = vmul.f32 1.442695, %v423_v58  ;;  %465 = vmatpush.msrb.mxu3 %v1514_v59 }
 0x41d   :  { %v333_v63 = vsel %vm289_vm4, %v1566_v60, 0.0 }
 0x41e   :  { %1567 = vpow2.f32 %v425_v61  ;;  %334 = vadd.xlane.f32.xlu0 %v333_v63  ;;  %466 = vmatpush.msrb.mxu3 %v1515_v62 }
 0x421   :  { %v422_v0 = vpop.xlane.xlu0 %421  ;;  %v1528_v33 = vpop.permute.xlu2 %1527 }
 0x422   :  { %v424_v1 = vsub.f32 %v415_v41, %v422_v0  ;;  %v1529_v34 = vunpack.i.l.bf16 %v1528_v33  ;;  %v1530_v11 = vunpack.i.h.bf16 %v1528_v33 }
 0x424   :  { %v1568_v2 = vpop.eup %1567  ;;  %v427_v3 = vmul.f32 1.442695, %v424_v1 }
 0x425   :  { %v429_v4 = vsel %vm289_vm4, %v1568_v2, 0.0 }
 0x426   :  { %1569 = vpow2.f32 %v427_v3  ;;  %430 = vadd.xlane.f32.xlu1 %v429_v4  ;;  %v182_v3 = vld [vmem:[#allocation2 + $0x68] sm:$0xff]  ;;  %v181_v4 = vld [vmem:[#allocation2 + $0x60] sm:$0xff] }
 0x429   :  { %v326_v5 = vpop.xlane.xlu0 %325 }
 0x42a   :  { %v328_v6 = vsub.f32 %v319_v44, %v326_v5  ;;  %v180_v5 = vld [vmem:[#allocation2 + $0x58] sm:$0xff] }
 0x42c   :  { %v1570_v7 = vpop.eup %1569  ;;  %v331_v8 = vmul.f32 1.442695, %v328_v6  ;;  %v179_v6 = vld [vmem:[#allocation2 + $0x50] sm:$0xff] }
 0x42d   :  { %v432_v9 = vsel %vm289_vm4, %v1570_v7, 0.0 }
 0x42e   :  { %1571 = vpow2.f32 %v331_v8  ;;  %433 = vadd.xlane.f32.xlu1 %v432_v9 }
 0x434   :  { %v1572_v10 = vpop.eup %1571 }
 0x435   :  { %v336_v13 = vsel %vm289_vm4, %v1572_v10, 0.0 }
 0x436   :  { %337 = vadd.xlane.f32.xlu0 %v336_v13 }
 0x447   :  { %1517 = vrot.lane.b32.xlu1 %v1511_v45, %s1688_s26 }
 0x44a   :  { %1522 = vrot.lane.b32.xlu0 %v1521_v53, %s1689_s27 }
 0x491   :  { %v335_v22 = vpop.xlane.xlu0 %334 }
 0x499   :  { %v431_v14 = vpop.xlane.xlu1 %430 }
 0x49a   :  { %1573 = vrcp.f32 %v431_v14 }
 0x4a0   :  { %v1574_v17 = vpop.eup %1573 }
 0x4a1   :  { %v434_v18 = vpop.xlane.xlu1 %433  ;;  %v437_v19 = vmul.f32 %v1574_v17, %v1568_v2 }
 0x4a2   :  { %1575 = vrcp.f32 %v434_v18 }
 0x4a3   :  { %1452 = vmatmul.msk.f32.vlgmr.msrb.gmra.mxu3 %vm289_vm4, %v437_v19  ;;  %1577 = vrcp.f32 %v335_v22 }
 0x4a8   :  { %v1576_v20 = vpop.eup %1575 }
 0x4a9   :  { %v438_v21 = vmul.f32 %v1576_v20, %v1570_v7  ;;  %v338_v51 = vpop.xlane.xlu0 %337  ;;  %v1578_v54 = vpop.eup %1577 }
 0x4aa   :  { %1579 = vrcp.f32 %v338_v51  ;;  %v341_v50 = vmul.f32 %v1578_v54, %v1566_v60 }
 0x4ab   :  { %1453 = vmatmul.msk.f32.gmra.mxu3 %vm289_vm4, %v438_v21 }
 0x4b0   :  { %v1580_v53 = vpop.eup %1579 }
 0x4b1   :  { %v342_v24 = vmul.f32 %v1580_v53, %v1572_v10 }
 0x4b9   :  { %v1518_v52 = vpop.permute.xlu1 %1517 }
 0x4ba   :  { %v1519_v23 = vunpack.i.l.bf16 %v1518_v52  ;;  %v1520_v49 = vunpack.i.h.bf16 %v1518_v52 }
 0x4bc   :  { %369 = vmatpush.msrb.mxu0 %v1519_v23  ;;  %v1523_v25 = vpop.permute.xlu0 %1522 }
 0x4bd   :  { %v1525_v26 = vunpack.i.h.bf16 %v1523_v25  ;;  %v1524_v29 = vunpack.i.l.bf16 %v1523_v25 }
 0x4be   :  { %370 = vmatpush.msrb.mxu0 %v1520_v49 }
 0x4bf   :  { %1446 = vmatmul.msk.f32.vlgmr.msrb.gmra.mxu0 %vm289_vm4, %v341_v50  ;;  %518 = vmatpush.msra.mxu1 %v1524_v29  ;;  %v1691_v29 = vmov 1.4142135  }
 0x4c0   :  { %600 = vmatpush.msra.mxu0 %v182_v3 }
 0x4c1   :  { %519 = vmatpush.msra.mxu1 %v1525_v26 }
 0x4c2   :  { %601 = vmatpush.msra.mxu0 %v181_v4  ;;  %v188_v4 = vld [vmem:[#allocation2 + $0x98] sm:$0xff] }
 0x4c3   :  { %520 = vmatpush.msra.mxu1 %v1529_v34 }
 0x4c4   :  { %602 = vmatpush.msra.mxu0 %v180_v5 }
 0x4c5   :  { %521 = vmatpush.msra.mxu1 %v1530_v11  ;;  %v199_v11 = vld [vmem:[#allocation2 + $0xf0] sm:$0xff] }
 0x4c6   :  { %603 = vmatpush.msra.mxu0 %v179_v6  ;;  %706 = vmatpush.msrb.mxu2 %v199_v11  ;;  %v187_v6 = vld [vmem:[#allocation2 + $0x90] sm:$0xff] }
 0x4c7   :  { %1447 = vmatmul.msk.f32.gmra.mxu0 %vm289_vm4, %v342_v24 }
 0x526   :  { %v468_v32 = vpop.f32.mrf.mxu3 }
 0x527   :  { %476 = vrot.lane.b32.xlu2 %v468_v32, %s1690_s28 }
 0x52e   :  { %v471_v36 = vpop.f32.mrf.mxu3 }
 0x52f   :  { %478 = vrot.lane.b32.xlu1 %v471_v36, %s1690_s28  ;;  %532 = vrot.lane.b32.xlu2 %v1779_v15, %s1689_s27 }
 0x53c   :  { %v372_v37 = vpop.f32.mrf.mxu0 }
 0x544   :  { %v375_v42 = vpop.f32.mrf.mxu0 }
 0x581   :  { %v477_v40 = vpop.permute.xlu2 %476 }
 0x582   :  { %v482_v41 = vsel %vm289_vm4, %v372_v37, %v477_v40  ;;  %v198_v37 = vld [vmem:[#allocation2 + $0xe8] sm:$0xff]  ;;  %v197_v40 = vld [vmem:[#allocation2 + $0xe0] sm:$0xff] }
 0x583   :  { %1454 = vmatmul.msk.f32.vlgmr.msra.gmra.mxu1 %vm201_vm12, %v482_v41  ;;  %707 = vmatpush.msrb.mxu2 %v198_v37 }
 0x585   :  { %708 = vmatpush.msrb.mxu2 %v197_v40 }
 0x589   :  { %v533_v46 = vpop.permute.xlu2 %532 }
 0x5a1   :  { %v479_v43 = vpop.permute.xlu1 %478 }
 0x5a2   :  { %v483_v44 = vsel %vm289_vm4, %v375_v42, %v479_v43  ;;  %v1553_v42 = vld [vmem:[#allocation2 + $0x70] ss:$0 sm:$0xff]  ;;  %v196_v43 = vld [vmem:[#allocation2 + $0xd8] sm:$0xff] }
 0x5a3   :  { %1455 = vmatmul.msk.f32.gmra.mxu1 %vm201_vm12, %v483_v44  ;;  %709 = vmatpush.msrb.mxu2 %v196_v43  ;;  %v195_v44 = vld [vmem:[#allocation2 + $0xd0] sm:$0xff] }
 0x5a5   :  { %710 = vmatpush.msrb.mxu2 %v195_v44 }
 0x600   :  { %v523_v45 = vpop.f32.mrf.mxu1 }
 0x601   :  { %v529_v47 = vadd.f32 %v523_v45, %v1743_v27 }
 0x603   :  { %v1851_v48 = vadd.f32 %v533_v46, %v529_v47 }
 0x605   :  { %v537_v15 = vsel %vm201_vm12, %v1851_v48, 0.0 }
 0x606   :  { %538 = vadd.xlane.f32.xlu0 %v537_v15  ;;  %v194_v15 = vld [vmem:[#allocation2 + $0xc8] sm:$0xff] }
 0x607   :  { %711 = vmatpush.msrb.mxu2 %v194_v15 }
 0x620   :  { %v526_v55 = vpop.f32.mrf.mxu1 }
 0x621   :  { %v530_v56 = vadd.f32 %v526_v55, %v1747_v30 }
 0x623   :  { %v1856_v57 = vadd.f32 %v533_v46, %v530_v56  ;;  %v193_v56 = vld [vmem:[#allocation2 + $0xc0] sm:$0xff] }
 0x624   :  { %712 = vmatpush.msrb.mxu2 %v193_v56 }
 0x625   :  { %v540_v58 = vsel %vm201_vm12, %v1856_v57, 0.0 }
 0x626   :  { %541 = vadd.xlane.f32.xlu1 %v540_v58 }
 0x679   :  { %v539_v59 = vpop.xlane.xlu0 %538 }
 0x67a   :  { %v543_v60 = vmul.f32 %v539_v59, %v1751_v38  ;;  %v192_v59 = vld [vmem:[#allocation2 + $0xb8] sm:$0xff] }
 0x67b   :  { %713 = vmatpush.msrb.mxu2 %v192_v59 }
 0x67c   :  { %v545_v27 = vsub.f32 %v1851_v48, %v543_v60 }
 0x67e   :  { %v547_v61 = vmul.f32 %v545_v27, %v545_v27 }
 0x680   :  { %v549_v62 = vsel %vm201_vm12, %v547_v61, 0.0 }
 0x681   :  { %550 = vadd.xlane.f32.xlu2 %v549_v62 }
 0x699   :  { %v542_v63 = vpop.xlane.xlu1 %541 }
 0x69a   :  { %v544_v0 = vmul.f32 %v542_v63, %v1751_v38  ;;  %v190_v63 = vld [vmem:[#allocation2 + $0xa8] sm:$0xff] }
 0x69c   :  { %v546_v30 = vsub.f32 %v1856_v57, %v544_v0 }
 0x69e   :  { %v548_v1 = vmul.f32 %v546_v30, %v546_v30 }
 0x6a0   :  { %v552_v2 = vsel %vm201_vm12, %v548_v1, 0.0  ;;  %v189_v1 = vld [vmem:[#allocation2 + $0xa0] sm:$0xff] }
 0x6a1   :  { %553 = vadd.xlane.f32.xlu0 %v552_v2 }
 0x6f4   :  { %v551_v7 = vpop.xlane.xlu2 %550 }
 0x6f5   :  { %v555_v8 = vmul.f32 %v551_v7, %v1751_v38 }
 0x6f7   :  { %v557_v9 = vadd.f32 1e-05, %v555_v8 }
 0x6f9   :  { %1581 = vrsqrt.f32 %v557_v9  ;;  %vm565_vm15 = vweird.f32 %v557_v9 }
 0x6ff   :  { %v1582_v10 = vpop.eup %1581 }
 0x700   :  { %v560_v13 = vmul.f32 %v1582_v10, %v557_v9  ;;  %vm566_vm14 = vweird.f32 %v1582_v10  ;;  %v186_v9 = vld [vmem:[#allocation2 + $0x88] sm:$0xff] }
 0x701   :  { %vm567_vm0 = vmor %vm565_vm15, %vm566_vm14 }
 0x702   :  { %v561_v14 = vmul.f32 %v1582_v10, %v560_v13  ;;  %v185_v13 = vld [vmem:[#allocation2 + $0x80] sm:$0xff] }
 0x704   :  { %v562_v17 = vmul.f32 0.5, %v561_v14 }
 0x706   :  { %v563_v18 = vsub.f32 1.5, %v562_v17 }
 0x708   :  { %v564_v19 = vmul.f32 %v1582_v10, %v563_v18  ;;  %v184_v18 = vld [vmem:[#allocation2 + $0x78] sm:$0xff] }
 0x70a   :  { %v568_v20 = vsel %vm567_vm0, %v1582_v10, %v564_v19 }
 0x70b   :  { %v579_v21 = vmul.f32 %v568_v20, %v545_v27  ;;  %v191_v27 = vld [vmem:[#allocation2 + $0xb0] sm:$0xff] }
 0x70c   :  { %714 = vmatpush.msrb.mxu2 %v191_v27 }
 0x70d   :  { %1456 = vmatmul.msk.f32.vlgmr.msra.gmra.mxu0 %vm201_vm12, %v579_v21 }
 0x70e   :  { %715 = vmatpush.msrb.mxu2 %v190_v63 }
 0x710   :  { %716 = vmatpush.msrb.mxu2 %v189_v1 }
 0x712   :  { %717 = vmatpush.msrb.mxu2 %v188_v4 }
 0x714   :  { %v554_v22 = vpop.xlane.xlu0 %553  ;;  %718 = vmatpush.msrb.mxu2 %v187_v6 }
 0x715   :  { %v556_v51 = vmul.f32 %v554_v22, %v1751_v38 }
 0x716   :  { %719 = vmatpush.msrb.mxu2 %v186_v9 }
 0x717   :  { %v558_v52 = vadd.f32 1e-05, %v556_v51 }
 0x718   :  { %720 = vmatpush.msrb.mxu2 %v185_v13 }
 0x719   :  { %1583 = vrsqrt.f32 %v558_v52  ;;  %vm575_vm2 = vweird.f32 %v558_v52 }
 0x71a   :  { %1585 = vrcp.f32 %v1691_v29  ;;  %721 = vmatpush.msrb.mxu2 %v184_v18 }
 0x71f   :  { %v1584_v54 = vpop.eup %1583 }
 0x720   :  { %v570_v23 = vmul.f32 %v1584_v54, %v558_v52  ;;  %vm576_vm1 = vweird.f32 %v1584_v54  ;;  %v1586_v32 = vpop.eup %1585 }
 0x721   :  { %vm577_vm3 = vmor %vm575_vm2, %vm576_vm1  ;;  %v614_v33 = vmul.f32 1.4142135, %v1586_v32  ;;  %vm618_vm5 = vweird.f32 %v1586_v32 }
 0x722   :  { %v571_v49 = vmul.f32 %v1584_v54, %v570_v23 }
 0x723   :  { %v615_v34 = vsub.f32 1.0, %v614_v33 }
 0x724   :  { %v572_v50 = vmul.f32 0.5, %v571_v49 }
 0x725   :  { %v616_v36 = vmul.f32 %v1586_v32, %v615_v34 }
 0x726   :  { %v573_v53 = vsub.f32 1.5, %v572_v50 }
 0x727   :  { %v617_v41 = vadd.f32 %v1586_v32, %v616_v36 }
 0x728   :  { %v574_v24 = vmul.f32 %v1584_v54, %v573_v53 }
 0x729   :  { %v1870_v46 = vsel %vm618_vm5, %v1586_v32, %v617_v41 }
 0x72a   :  { %v578_v25 = vsel %vm577_vm3, %v1584_v54, %v574_v24 }
 0x72b   :  { %v580_v26 = vmul.f32 %v578_v25, %v546_v30 }
 0x72d   :  { %1457 = vmatmul.msk.f32.gmra.mxu0 %vm201_vm12, %v580_v26 }
 0x78a   :  { %v605_v45 = vpop.f32.mrf.mxu0 }
 0x78b   :  { %v1872_v47 = vadd.f32 %v1553_v42, %v605_v45 }
 0x78d   :  { %v1876_v55 = vmul.f32 %v1870_v46, %v1872_v47  ;;  %v611_v63 = vmul.f32 0.5, %v1872_v47 }
 0x78f   :  { %v622_v58 = vmul.f32 %v1876_v55, %v1876_v55 }
 0x791   :  { %v623_v60 = vmin.f32 %v622_v58, 16.0 }
 0x793   :  { %v624_v61 = vmul.f32 2.1237322e-06, %v623_v60  ;;  %v635_v62 = vmul.f32 3.8918573e-05, %v623_v60 }
 0x795   :  { %v625_v0 = vadd.f32 0.00028619796, %v624_v61  ;;  %v636_v30 = vadd.f32 0.001143296, %v635_v62 }
 0x797   :  { %v626_v2 = vmul.f32 %v625_v0, %v623_v60  ;;  %v637_v3 = vmul.f32 %v636_v30, %v623_v60 }
 0x799   :  { %v638_v5 = vadd.f32 0.014752088, %v637_v3  ;;  %v627_v7 = vadd.f32 0.0036580483, %v626_v2 }
 0x79b   :  { %v639_v8 = vmul.f32 %v638_v5, %v623_v60  ;;  %v628_v14 = vmul.f32 %v627_v7, %v623_v60 }
 0x79d   :  { %v640_v10 = vadd.f32 0.112945676, %v639_v8  ;;  %v629_v20 = vadd.f32 0.05243302, %v628_v14 }
 0x79f   :  { %v641_v17 = vmul.f32 %v640_v10, %v623_v60  ;;  %v630_v51 = vmul.f32 %v629_v20, %v623_v60 }
 0x7a1   :  { %v642_v19 = vadd.f32 0.4994258, %v641_v17  ;;  %v631_v52 = vadd.f32 0.18741608, %v630_v51 }
 0x7a3   :  { %v643_v21 = vmul.f32 %v642_v19, %v623_v60  ;;  %v632_v53 = vmul.f32 %v631_v52, %v623_v60 }
 0x7a5   :  { %v644_v22 = vadd.f32 1.0, %v643_v21  ;;  %v633_v33 = vadd.f32 1.1283791, %v632_v53 }
 0x7a7   :  { %1587 = vrcp.f32 %v644_v22  ;;  %v656_v29 = vand.u32 2147483648, %v644_v22  ;;  %v654_v11 = vand.u32 2147483647, %v644_v22  ;;  %vm650_vm7 = vweird.f32 %v644_v22 }
 0x7a8   :  { %v634_v44 = vmul.f32 %v633_v33, %v1876_v55 }
 0x7a9   :  { %v657_v41 = vor.u32 1.1754944e-38, %v656_v29  ;;  %vm655_vm9 = vcmp.eq.f32.partialorder %v654_v11, 8.507059e+37 }
 0x7aa   :  { %v608_v54 = vpop.f32.mrf.mxu0 }
 0x7ab   :  { %v1880_v23 = vadd.f32 %v1553_v42, %v608_v54 }
 0x7ad   :  { %v1588_v49 = vpop.eup %1587  ;;  %v621_v50 = vmul.f32 %v1870_v46, %v1880_v23  ;;  %v612_v53 = vmul.f32 0.5, %v1880_v23 }
 0x7ae   :  { %v646_v24 = vmul.f32 %v1588_v49, %v644_v22  ;;  %vm651_vm6 = vweird.f32 %v1588_v49 }
 0x7af   :  { %v662_v25 = vmul.f32 %v621_v50, %v621_v50  ;;  %vm652_vm8 = vmor %vm650_vm7, %vm651_vm6 }
 0x7b0   :  { %v647_v26 = vsub.f32 1.0, %v646_v24 }
 0x7b1   :  { %v663_v32 = vmin.f32 %v662_v25, 16.0 }
 0x7b2   :  { %v648_v34 = vmul.f32 %v1588_v49, %v647_v26  ;;  %v1554_v26 = vld [vmem:[#allocation2 + $0xf8] ss:$0 sm:$0xff] }
 0x7b3   :  { %v664_v36 = vmul.f32 2.1237322e-06, %v663_v32  ;;  %v675_v37 = vmul.f32 3.8918573e-05, %v663_v32 }
 0x7b4   :  { %v649_v40 = vadd.f32 %v1588_v49, %v648_v34 }
 0x7b5   :  { %v665_v42 = vadd.f32 0.00028619796, %v664_v36  ;;  %v676_v43 = vadd.f32 0.001143296, %v675_v37 }
 0x7b6   :  { %v653_v45 = vsel %vm652_vm8, %v1588_v49, %v649_v40 }
 0x7b7   :  { %v658_v15 = vsel %vm655_vm9, %v657_v41, %v653_v45  ;;  %v666_v56 = vmul.f32 %v665_v42, %v663_v32  ;;  %v677_v58 = vmul.f32 %v676_v43, %v663_v32 }
 0x7b8   :  { %v659_v59 = vmul.f32 %v658_v15, %v634_v44 }
 0x7b9   :  { %v678_v60 = vadd.f32 0.014752088, %v677_v58  ;;  %v667_v61 = vadd.f32 0.0036580483, %v666_v56  ;;  %v1903_v56 = vld [vmem:[#allocation2 + $0x118] sm:$0xff]  ;;  %v1906_v58 = vld [vmem:[#allocation2 + $0x110] sm:$0xff] }
 0x7ba   :  { %v1458_v27 = vclamps-f32 %v659_v59, 1.0  ;;  %824 = vmatpush.msra.mxu3 %v1903_v56  ;;  %v1909_v59 = vld [vmem:[#allocation2 + $0x108] sm:$0xff] }
 0x7bb   :  { %v679_v62 = vmul.f32 %v678_v60, %v663_v32  ;;  %v668_v2 = vmul.f32 %v667_v61, %v663_v32  ;;  %v1541_v60 = vpack.i.bf16 %v1906_v58, %v1903_v56 }
 0x7bc   :  { %v702_v0 = vadd.f32 1.0, %v1458_v27  ;;  %825 = vmatpush.msra.mxu3 %v1906_v58  ;;  %v1914_v27 = vld [vmem:[#allocation2 + $0x100] sm:$0xff] }
 0x7bd   :  { %v680_v30 = vadd.f32 0.112945676, %v679_v62  ;;  %v669_v55 = vadd.f32 0.05243302, %v668_v2  ;;  %v1546_v61 = vpack.i.bf16 %v1914_v27, %v1909_v59 }
 0x7be   :  { %v704_v1 = vmul.f32 %v702_v0, %v611_v63  ;;  %826 = vmatpush.msra.mxu3 %v1909_v59 }
 0x7bf   :  { %v681_v3 = vmul.f32 %v680_v30, %v663_v32  ;;  %v670_v7 = vmul.f32 %v669_v55, %v663_v32 }
 0x7c0   :  { %722 = vmatmul.f32.vlgmr.msrb.gmra.mxu2 %v704_v1  ;;  %827 = vmatpush.msra.mxu3 %v1914_v27 }
 0x7c1   :  { %v682_v4 = vadd.f32 0.4994258, %v681_v3  ;;  %v671_v8 = vadd.f32 0.18741608, %v670_v7 }
 0x7c3   :  { %v683_v5 = vmul.f32 %v682_v4, %v663_v32  ;;  %v672_v10 = vmul.f32 %v671_v8, %v663_v32 }
 0x7c5   :  { %v684_v6 = vadd.f32 1.0, %v683_v5  ;;  %v673_v18 = vadd.f32 1.1283791, %v672_v10 }
 0x7c7   :  { %1589 = vrcp.f32 %v684_v6  ;;  %v696_v17 = vand.u32 2147483648, %v684_v6  ;;  %v694_v19 = vand.u32 2147483647, %v684_v6  ;;  %vm690_vm11 = vweird.f32 %v684_v6 }
 0x7c8   :  { %v674_v22 = vmul.f32 %v673_v18, %v621_v50 }
 0x7c9   :  { %v697_v21 = vor.u32 1.1754944e-38, %v696_v17  ;;  %vm695_vm14 = vcmp.eq.f32.partialorder %v694_v19, 8.507059e+37 }
 0x7cd   :  { %v1590_v9 = vpop.eup %1589 }
 0x7ce   :  { %v686_v13 = vmul.f32 %v1590_v9, %v684_v6  ;;  %vm691_vm10 = vweird.f32 %v1590_v9 }
 0x7cf   :  { %vm692_vm13 = vmor %vm690_vm11, %vm691_vm10 }
 0x7d0   :  { %v687_v14 = vsub.f32 1.0, %v686_v13 }
 0x7d2   :  { %v688_v47 = vmul.f32 %v1590_v9, %v687_v14 }
 0x7d4   :  { %v689_v20 = vadd.f32 %v1590_v9, %v688_v47 }
 0x7d6   :  { %v693_v51 = vsel %vm692_vm13, %v1590_v9, %v689_v20 }
 0x7d7   :  { %v698_v52 = vsel %vm695_vm14, %v697_v21, %v693_v51  ;;  %v1923_v21 = vld [vmem:[#allocation2 + $0x120] ss:$0 sm:$0xff] }
 0x7d8   :  { %v699_v54 = vmul.f32 %v698_v52, %v674_v22 }
 0x7da   :  { %v1459_v49 = vclamps-f32 %v699_v54, 1.0 }
 0x7dc   :  { %v703_v24 = vadd.f32 1.0, %v1459_v49 }
 0x7de   :  { %v705_v25 = vmul.f32 %v703_v24, %v612_v53 }
 0x7e0   :  { %725 = vmatmul.f32.gmra.mxu2 %v705_v25 }
 0x843   :  { %v723_v29 = vpop.f32.mrf.mxu2 }
 0x844   :  { %v729_v32 = vadd.f32 %v723_v29, %v1851_v48 }
 0x846   :  { %v1888_v33 = vadd.f32 %v1554_v26, %v729_v32 }
 0x848   :  { %v761_v34 = vsel %vm201_vm12, %v1888_v33, 0.0 }
 0x849   :  { %762 = vadd.xlane.f32.xlu1 %v761_v34 }
 0x863   :  { %v726_v50 = vpop.f32.mrf.mxu2 }
 0x864   :  { %v730_v11 = vadd.f32 %v726_v50, %v1856_v57 }
 0x866   :  { %v1893_v36 = vadd.f32 %v1554_v26, %v730_v11 }
 0x868   :  { %v764_v23 = vsel %vm201_vm12, %v1893_v36, 0.0 }
 0x869   :  { %765 = vadd.xlane.f32.xlu2 %v764_v23 }
 0x8bc   :  { %v763_v37 = vpop.xlane.xlu1 %762 }
 0x8bd   :  { %v767_v40 = vmul.f32 %v763_v37, %v1751_v38 }
 0x8bf   :  { %v769_v48 = vsub.f32 %v1888_v33, %v767_v40 }
 0x8c1   :  { %v771_v41 = vmul.f32 %v769_v48, %v769_v48 }
 0x8c3   :  { %v773_v42 = vsel %vm201_vm12, %v771_v41, 0.0 }
 0x8c4   :  { %774 = vadd.xlane.f32.xlu0 %v773_v42 }
 0x8dc   :  { %v766_v43 = vpop.xlane.xlu2 %765 }
 0x8dd   :  { %v768_v44 = vmul.f32 %v766_v43, %v1751_v38 }
 0x8df   :  { %v770_v57 = vsub.f32 %v1893_v36, %v768_v44 }
 0x8e1   :  { %v772_v45 = vmul.f32 %v770_v57, %v770_v57 }
 0x8e3   :  { %v776_v15 = vsel %vm201_vm12, %v772_v45, 0.0 }
 0x8e4   :  { %777 = vadd.xlane.f32.xlu1 %v776_v15 }
 0x937   :  { %v775_v62 = vpop.xlane.xlu0 %774 }
 0x938   :  { %v779_v63 = vmul.f32 %v775_v62, %v1751_v38 }
 0x93a   :  { %v781_v0 = vadd.f32 1e-05, %v779_v63 }
 0x93c   :  { %1591 = vrsqrt.f32 %v781_v0  ;;  %vm789_vm0 = vweird.f32 %v781_v0 }
 0x942   :  { %v1592_v30 = vpop.eup %1591 }
 0x943   :  { %v784_v1 = vmul.f32 %v1592_v30, %v781_v0  ;;  %vm790_vm15 = vweird.f32 %v1592_v30 }
 0x944   :  { %vm791_vm1 = vmor %vm789_vm0, %vm790_vm15 }
 0x945   :  { %v785_v2 = vmul.f32 %v1592_v30, %v784_v1 }
 0x947   :  { %v786_v3 = vmul.f32 0.5, %v785_v2 }
 0x949   :  { %v787_v4 = vsub.f32 1.5, %v786_v3 }
 0x94b   :  { %v788_v55 = vmul.f32 %v1592_v30, %v787_v4 }
 0x94d   :  { %v792_v5 = vsel %vm791_vm1, %v1592_v30, %v788_v55 }
 0x94e   :  { %v803_v6 = vmul.f32 %v792_v5, %v769_v48 }
 0x950   :  { %1460 = vmatmul.msk.f32.vlgmr.msra.gmra.mxu3 %vm201_vm12, %v803_v6 }
 0x957   :  { %v778_v7 = vpop.xlane.xlu1 %777 }
 0x958   :  { %v780_v8 = vmul.f32 %v778_v7, %v1751_v38 }
 0x95a   :  { %v782_v9 = vadd.f32 1e-05, %v780_v8 }
 0x95c   :  { %1593 = vrsqrt.f32 %v782_v9  ;;  %vm799_vm3 = vweird.f32 %v782_v9 }
 0x962   :  { %v1594_v10 = vpop.eup %1593 }
 0x963   :  { %v794_v13 = vmul.f32 %v1594_v10, %v782_v9  ;;  %vm800_vm2 = vweird.f32 %v1594_v10 }
 0x964   :  { %vm801_vm5 = vmor %vm799_vm3, %vm800_vm2 }
 0x965   :  { %v795_v14 = vmul.f32 %v1594_v10, %v794_v13 }
 0x967   :  { %v796_v17 = vmul.f32 0.5, %v795_v14 }
 0x969   :  { %v797_v18 = vsub.f32 1.5, %v796_v17 }
 0x96b   :  { %v798_v47 = vmul.f32 %v1594_v10, %v797_v18 }
 0x96d   :  { %v802_v19 = vsel %vm801_vm5, %v1594_v10, %v798_v47 }
 0x96e   :  { %v804_v20 = vmul.f32 %v802_v19, %v770_v57 }
 0x970   :  { %1461 = vmatmul.msk.f32.gmra.mxu3 %vm201_vm12, %v804_v20 }
 0x9d3   :  { %v829_v22 = vpop.f32.mrf.mxu3 }
 0x9d4   :  { %v830_v51 = vadd.f32 %v1923_v21, %v829_v22 }
 0x9d6   :  { %929 = vrot.lane.b32.xlu1 %v830_v51, %s1685_s24  ;;  %933 = vrot.lane.b32.xlu0 %v830_v51, %s1684_s1 }
 0x9de   :  { %837 = vrot.lane.b32.xlu1 %v830_v51, %s1683_s0 }
 0x9f3   :  { %v832_v52 = vpop.f32.mrf.mxu3 }
 0x9f4   :  { %v833_v54 = vadd.f32 %v1923_v21, %v832_v52 }
 0x9f6   :  { %931 = vrot.lane.b32.xlu0 %v833_v54, %s1685_s24  ;;  %935 = vrot.lane.b32.xlu2 %v833_v54, %s1684_s1  ;;  %v1531_v57 = vpack.i.bf16 %v830_v51, %v833_v54 }
 0x9fe   :  { %839 = vrot.lane.b32.xlu2 %v833_v54, %s1683_s0 }
 0xa48   :  { %v930_v53 = vpop.permute.xlu1 %929  ;;  %v934_v24 = vpop.permute.xlu0 %933 }
 0xa50   :  { %v936_v49 = vpop.permute.xlu2 %935  ;;  %v838_v26 = vpop.permute.xlu1 %837 }
 0xa51   :  { %1468 = vmatpush.xpose.msk.msrb.mxu3 %vm289_vm4, %v936_v49 }
 0xa55   :  { %1469 = vmatpush.xpose.msk.msrb.mxu3 %vm289_vm4, %v934_v24 }
 0xa58   :  { %v840_v25 = vpop.permute.xlu2 %839  ;;  %1470 = vmatmul.msk.f32.vlgmr.msrb.gmra.mxu3 %vm289_vm4, %v930_v53 }
 0xa59   :  { %1462 = vmatpush.xpose.msk.msrb.mxu1 %vm289_vm4, %v840_v25 }
 0xa5d   :  { %1463 = vmatpush.xpose.msk.msrb.mxu1 %vm289_vm4, %v838_v26 }
 0xa60   :  { %1464 = vmatmul.msk.f32.vlgmr.msrb.gmra.mxu1 %vm289_vm4, %v830_v51 }
 0xa68   :  { %v932_v29 = vpop.permute.xlu0 %931  ;;  %1465 = vmatmul.msk.f32.gmra.mxu1 %vm289_vm4, %v833_v54 }
 0xa69   :  { %1471 = vmatmul.msk.f32.gmra.mxu3 %vm289_vm4, %v932_v29 }
 0xadb   :  { %v962_v32 = vpop.f32.mrf.mxu3 }
 0xadc   :  { %v963_v34 = vadd.f32 %v962_v32, %v1805_v31 }
 0xadd   :  { %v866_v50 = vpop.f32.mrf.mxu1 }
 0xade   :  { %v867_v11 = vadd.f32 %v866_v50, %v1805_v31  ;;  %v968_v23 = vsel %vm289_vm4, %v963_v34, -inf }
 0xadf   :  { %969 = vmax.xlane.f32.xlu0 %v968_v23 }
 0xae0   :  { %v872_v37 = vsel %vm289_vm4, %v867_v11, -inf }
 0xae1   :  { %873 = vmax.xlane.f32.xlu1 %v872_v37 }
 0xae5   :  { %v869_v40 = vpop.f32.mrf.mxu1 }
 0xae6   :  { %v870_v48 = vadd.f32 %v869_v40, %v1818_v39 }
 0xae8   :  { %v875_v41 = vsel %vm289_vm4, %v870_v48, -inf }
 0xae9   :  { %876 = vmax.xlane.f32.xlu0 %v875_v41 }
 0xaec   :  { %v965_v42 = vpop.f32.mrf.mxu3 }
 0xaed   :  { %v966_v43 = vadd.f32 %v965_v42, %v1818_v39 }
 0xaef   :  { %v971_v44 = vsel %vm289_vm4, %v966_v43, -inf }
 0xaf0   :  { %972 = vmax.xlane.f32.xlu2 %v971_v44 }
 0xafa   :  { %1532 = vrot.lane.b32.xlu1 %v1531_v57, %s1687_s25 }
 0xb02   :  { %1547 = vrot.lane.b32.xlu1 %v1546_v61, %s1689_s27 }
 0xb52   :  { %v970_v31 = vpop.xlane.xlu0 %969 }
 0xb53   :  { %v974_v45 = vsub.f32 %v963_v34, %v970_v31 }
 0xb54   :  { %v874_v15 = vpop.xlane.xlu1 %873 }
 0xb55   :  { %v976_v62 = vmul.f32 1.442695, %v974_v45  ;;  %v878_v63 = vsub.f32 %v867_v11, %v874_v15 }
 0xb57   :  { %1595 = vpow2.f32 %v976_v62  ;;  %v880_v0 = vmul.f32 1.442695, %v878_v63 }
 0xb59   :  { %1597 = vpow2.f32 %v880_v0 }
 0xb5c   :  { %v877_v30 = vpop.xlane.xlu0 %876 }
 0xb5d   :  { %v1596_v39 = vpop.eup %1595  ;;  %v879_v1 = vsub.f32 %v870_v48, %v877_v30 }
 0xb5e   :  { %v980_v2 = vsel %vm289_vm4, %v1596_v39, 0.0 }
 0xb5f   :  { %981 = vadd.xlane.f32.xlu2 %v980_v2  ;;  %v882_v3 = vmul.f32 1.442695, %v879_v1  ;;  %v1598_v4 = vpop.eup %1597 }
 0xb60   :  { %v884_v27 = vsel %vm289_vm4, %v1598_v4, 0.0 }
 0xb61   :  { %1599 = vpow2.f32 %v882_v3 }
 0xb63   :  { %v973_v55 = vpop.xlane.xlu2 %972 }
 0xb64   :  { %v975_v5 = vsub.f32 %v966_v43, %v973_v55 }
 0xb66   :  { %v978_v59 = vmul.f32 1.442695, %v975_v5  ;;  %v742_v5 = vld [vmem:[#allocation2 + $0x140] sm:$0xff] }
 0xb67   :  { %885 = vadd.xlane.f32.xlu2 %v884_v27  ;;  %v1600_v61 = vpop.eup %1599  ;;  %1151 = vmatpush.msra.mxu2 %v742_v5  ;;  %v740_v27 = vld [vmem:[#allocation2 + $0x130] sm:$0xff] }
 0xb68   :  { %1601 = vpow2.f32 %v978_v59  ;;  %v887_v9 = vsel %vm289_vm4, %v1600_v61, 0.0  ;;  %v741_v59 = vld [vmem:[#allocation2 + $0x138] sm:$0xff] }
 0xb69   :  { %1152 = vmatpush.msra.mxu2 %v741_v59 }
 0xb6b   :  { %1153 = vmatpush.msra.mxu2 %v740_v27 }
 0xb6c   :  { %v1533_v6 = vpop.permute.xlu1 %1532 }
 0xb6d   :  { %v1534_v7 = vunpack.i.l.bf16 %v1533_v6  ;;  %v1535_v10 = vunpack.i.h.bf16 %v1533_v6 }
 0xb6e   :  { %v1602_v8 = vpop.eup %1601 }
 0xb6f   :  { %888 = vadd.xlane.f32.xlu2 %v887_v9  ;;  %1016 = vmatpush.msra.mxu1 %v1534_v7  ;;  %v983_v13 = vsel %vm289_vm4, %v1602_v8, 0.0 }
 0xb70   :  { %984 = vadd.xlane.f32.xlu0 %v983_v13 }
 0xb71   :  { %1017 = vmatpush.msra.mxu1 %v1535_v10 }
 0xb74   :  { %v1548_v26 = vpop.permute.xlu1 %1547 }
 0xb75   :  { %v1549_v34 = vunpack.i.l.bf16 %v1548_v26  ;;  %v1550_v50 = vunpack.i.h.bf16 %v1548_v26  ;;  %v758_v26 = vld [vmem:[#allocation2 + $0x1c0] sm:$0xff] }
 0xb84   :  { %1537 = vrot.lane.b32.xlu0 %v1531_v57, %s1688_s26 }
 0xb87   :  { %1542 = vrot.lane.b32.xlu2 %v1541_v60, %s1689_s27 }
 0xbd2   :  { %v982_v14 = vpop.xlane.xlu2 %981 }
 0xbd3   :  { %1603 = vrcp.f32 %v982_v14 }
 0xbd9   :  { %v1604_v17 = vpop.eup %1603 }
 0xbda   :  { %v988_v18 = vmul.f32 %v1604_v17, %v1596_v39  ;;  %v886_v22 = vpop.xlane.xlu2 %885 }
 0xbdc   :  { %1472 = vmatmul.msk.f32.vlgmr.msra.gmra.mxu1 %vm289_vm4, %v988_v18 }
 0xbe2   :  { %v889_v51 = vpop.xlane.xlu2 %888 }
 0xbe3   :  { %v985_v47 = vpop.xlane.xlu0 %984 }
 0xbe4   :  { %1605 = vrcp.f32 %v985_v47 }
 0xbe5   :  { %1607 = vrcp.f32 %v886_v22 }
 0xbe6   :  { %1609 = vrcp.f32 %v889_v51 }
 0xbea   :  { %v1606_v19 = vpop.eup %1605  ;;  %v1543_v25 = vpop.permute.xlu2 %1542 }
 0xbeb   :  { %v989_v20 = vmul.f32 %v1606_v19, %v1602_v8  ;;  %v1608_v54 = vpop.eup %1607  ;;  %v1545_v29 = vunpack.i.h.bf16 %v1543_v25  ;;  %v1544_v32 = vunpack.i.l.bf16 %v1543_v25  ;;  %v759_v25 = vld [vmem:[#allocation2 + $0x1c8] sm:$0xff] }
 0xbec   :  { %v892_v58 = vmul.f32 %v1608_v54, %v1598_v4  ;;  %v1610_v60 = vpop.eup %1609  ;;  %1250 = vmatpush.msra.mxu3 %v759_v25 }
 0xbed   :  { %1473 = vmatmul.msk.f32.gmra.mxu1 %vm289_vm4, %v989_v20  ;;  %v893_v53 = vmul.f32 %v1610_v60, %v1600_v61  ;;  %v739_v61 = vld [vmem:[#allocation2 + $0x128] sm:$0xff] }
 0xbee   :  { %1154 = vmatpush.msra.mxu2 %v739_v61  ;;  %1251 = vmatpush.msra.mxu3 %v758_v26  ;;  %v745_v61 = vld [vmem:[#allocation2 + $0x158] sm:$0xff] }
 0xbf6   :  { %v1538_v52 = vpop.permute.xlu0 %1537 }
 0xbf7   :  { %v1539_v49 = vunpack.i.l.bf16 %v1538_v52  ;;  %v1540_v56 = vunpack.i.h.bf16 %v1538_v52 }
 0xbf9   :  { %920 = vmatpush.msrb.mxu0 %v1539_v49 }
 0xbfb   :  { %921 = vmatpush.msrb.mxu0 %v1540_v56 }
 0xbfc   :  { %1466 = vmatmul.msk.f32.vlgmr.msrb.gmra.mxu0 %vm289_vm4, %v892_v58 }
 0xbfd   :  { %1069 = vmatpush.msra.mxu0 %v1544_v32  ;;  %v1556_v32 = vld [vmem:[#allocation2 + $0x148] ss:$0 sm:$0xff] }
 0xbff   :  { %1070 = vmatpush.msra.mxu0 %v1545_v29  ;;  %v757_v29 = vld [vmem:[#allocation2 + $0x1b8] sm:$0xff] }
 0xc00   :  { %1252 = vmatpush.msra.mxu3 %v757_v29 }
 0xc01   :  { %1071 = vmatpush.msra.mxu0 %v1549_v34  ;;  %v756_v34 = vld [vmem:[#allocation2 + $0x1b0] sm:$0xff] }
 0xc02   :  { %1253 = vmatpush.msra.mxu3 %v756_v34 }
 0xc03   :  { %1072 = vmatpush.msra.mxu0 %v1550_v50  ;;  %v755_v50 = vld [vmem:[#allocation2 + $0x1a8] sm:$0xff] }
 0xc04   :  { %1467 = vmatmul.msk.f32.gmra.mxu0 %vm289_vm4, %v893_v53  ;;  %1254 = vmatpush.msra.mxu3 %v755_v50 }
 0xc59   :  { %v1019_v24 = vpop.f32.mrf.mxu1 }
 0xc5a   :  { %1027 = vrot.lane.b32.xlu0 %v1019_v24, %s1690_s28 }
 0xc62   :  { %1083 = vrot.lane.b32.xlu0 %v1923_v21, %s1689_s27 }
 0xc6a   :  { %v1022_v11 = vpop.f32.mrf.mxu1 }
 0xc6b   :  { %1029 = vrot.lane.b32.xlu1 %v1022_v11, %s1690_s28 }
 0xc79   :  { %v923_v23 = vpop.f32.mrf.mxu0 }
 0xc81   :  { %v926_v48 = vpop.f32.mrf.mxu0 }
 0xccc   :  { %v1028_v37 = vpop.permute.xlu0 %1027 }
 0xccd   :  { %v1033_v40 = vsel %vm289_vm4, %v923_v23, %v1028_v37  ;;  %v754_v37 = vld [vmem:[#allocation2 + $0x1a0] sm:$0xff] }
 0xcce   :  { %1474 = vmatmul.msk.f32.vlgmr.msra.gmra.mxu0 %vm201_vm12, %v1033_v40  ;;  %1255 = vmatpush.msra.mxu3 %v754_v37 }
 0xcd4   :  { %v1084_v43 = vpop.permute.xlu0 %1083 }
 0xcdd   :  { %v1030_v41 = vpop.permute.xlu1 %1029 }
 0xcde   :  { %v1034_v42 = vsel %vm289_vm4, %v926_v48, %v1030_v41  ;;  %v753_v48 = vld [vmem:[#allocation2 + $0x198] sm:$0xff] }
 0xcdf   :  { %1475 = vmatmul.msk.f32.gmra.mxu0 %vm201_vm12, %v1034_v42  ;;  %1256 = vmatpush.msra.mxu3 %v753_v48  ;;  %v752_v42 = vld [vmem:[#allocation2 + $0x190] sm:$0xff] }
 0xce1   :  { %1257 = vmatpush.msra.mxu3 %v752_v42 }
 0xd4b   :  { %v1074_v21 = vpop.f32.mrf.mxu0 }
 0xd4c   :  { %v1080_v44 = vadd.f32 %v1074_v21, %v1888_v33 }
 0xd4e   :  { %v1976_v57 = vadd.f32 %v1084_v43, %v1080_v44 }
 0xd50   :  { %v1088_v31 = vsel %vm201_vm12, %v1976_v57, 0.0 }
 0xd51   :  { %1089 = vadd.xlane.f32.xlu1 %v1088_v31 }
 0xd5c   :  { %v1077_v45 = vpop.f32.mrf.mxu0 }
 0xd5d   :  { %v1081_v15 = vadd.f32 %v1077_v45, %v1893_v36  ;;  %v750_v45 = vld [vmem:[#allocation2 + $0x180] sm:$0xff] }
 0xd5f   :  { %v1981_v62 = vadd.f32 %v1084_v43, %v1081_v15  ;;  %v751_v43 = vld [vmem:[#allocation2 + $0x188] sm:$0xff] }
 0xd60   :  { %1258 = vmatpush.msra.mxu3 %v751_v43 }
 0xd61   :  { %v1091_v63 = vsel %vm201_vm12, %v1981_v62, 0.0 }
 0xd62   :  { %1092 = vadd.xlane.f32.xlu2 %v1091_v63  ;;  %1259 = vmatpush.msra.mxu3 %v750_v45 }
 0xdc4   :  { %v1090_v0 = vpop.xlane.xlu1 %1089 }
 0xdc5   :  { %v1094_v30 = vmul.f32 %v1090_v0, %v1751_v38  ;;  %v749_v0 = vld [vmem:[#allocation2 + $0x178] sm:$0xff] }
 0xdc6   :  { %1260 = vmatpush.msra.mxu3 %v749_v0 }
 0xdc7   :  { %v1096_v33 = vsub.f32 %v1976_v57, %v1094_v30 }
 0xdc9   :  { %v1098_v39 = vmul.f32 %v1096_v33, %v1096_v33 }
 0xdcb   :  { %v1100_v1 = vsel %vm201_vm12, %v1098_v39, 0.0  ;;  %v748_v39 = vld [vmem:[#allocation2 + $0x170] sm:$0xff] }
 0xdcc   :  { %1101 = vadd.xlane.f32.xlu0 %v1100_v1  ;;  %1261 = vmatpush.msra.mxu3 %v748_v39 }
 0xdd5   :  { %v1093_v2 = vpop.xlane.xlu2 %1092 }
 0xdd6   :  { %v1095_v3 = vmul.f32 %v1093_v2, %v1751_v38 }
 0xdd8   :  { %v1097_v36 = vsub.f32 %v1981_v62, %v1095_v3  ;;  %v747_v3 = vld [vmem:[#allocation2 + $0x168] sm:$0xff] }
 0xdd9   :  { %1262 = vmatpush.msra.mxu3 %v747_v3 }
 0xdda   :  { %v1099_v4 = vmul.f32 %v1097_v36, %v1097_v36 }
 0xddc   :  { %v1103_v55 = vsel %vm201_vm12, %v1099_v4, 0.0 }
 0xddd   :  { %1104 = vadd.xlane.f32.xlu2 %v1103_v55  ;;  %v746_v55 = vld [vmem:[#allocation2 + $0x160] sm:$0xff] }
 0xdde   :  { %1263 = vmatpush.msra.mxu3 %v746_v55 }
 0xde0   :  { %1264 = vmatpush.msra.mxu3 %v745_v61 }
 0xe3f   :  { %v1102_v6 = vpop.xlane.xlu0 %1101 }
 0xe40   :  { %v1106_v7 = vmul.f32 %v1102_v6, %v1751_v38 }
 0xe42   :  { %v1108_v8 = vadd.f32 1e-05, %v1106_v7  ;;  %v744_v7 = vld [vmem:[#allocation2 + $0x150] sm:$0xff] }
 0xe43   :  { %1265 = vmatpush.msra.mxu3 %v744_v7 }
 0xe44   :  { %1611 = vrsqrt.f32 %v1108_v8  ;;  %vm1116_vm7 = vweird.f32 %v1108_v8 }
 0xe4a   :  { %v1612_v9 = vpop.eup %1611 }
 0xe4b   :  { %v1111_v10 = vmul.f32 %v1612_v9, %v1108_v8  ;;  %vm1117_vm6 = vweird.f32 %v1612_v9 }
 0xe4c   :  { %vm1118_vm8 = vmor %vm1116_vm7, %vm1117_vm6  ;;  %vm1278_vm6 = vcmp.lt.s32.totalorder %v1800_v28, 7 }
 0xe4d   :  { %v1112_v13 = vmul.f32 %v1612_v9, %v1111_v10 }
 0xe4f   :  { %v1113_v14 = vmul.f32 0.5, %v1112_v13 }
 0xe50   :  { %v1105_v17 = vpop.xlane.xlu2 %1104 }
 0xe51   :  { %v1114_v18 = vsub.f32 1.5, %v1113_v14  ;;  %v1107_v47 = vmul.f32 %v1105_v17, %v1751_v38 }
 0xe53   :  { %v1115_v19 = vmul.f32 %v1612_v9, %v1114_v18  ;;  %v1109_v20 = vadd.f32 1e-05, %v1107_v47 }
 0xe55   :  { %v1119_v22 = vsel %vm1118_vm8, %v1612_v9, %v1115_v19  ;;  %1613 = vrsqrt.f32 %v1109_v20  ;;  %vm1126_vm10 = vweird.f32 %v1109_v20  ;;  %vm1288_vm8 = vcmp.ge.s32.totalorder %v1800_v28, 7 }
 0xe56   :  { %v1130_v51 = vmul.f32 %v1119_v22, %v1096_v33 }
 0xe58   :  { %1476 = vmatmul.msk.f32.vlgmr.msra.gmra.mxu2 %vm201_vm12, %v1130_v51 }
 0xe5b   :  { %v1614_v52 = vpop.eup %1613 }
 0xe5c   :  { %v1121_v54 = vmul.f32 %v1614_v52, %v1109_v20  ;;  %vm1127_vm9 = vweird.f32 %v1614_v52 }
 0xe5d   :  { %vm1128_vm11 = vmor %vm1126_vm10, %vm1127_vm9 }
 0xe5e   :  { %v1122_v49 = vmul.f32 %v1614_v52, %v1121_v54 }
 0xe60   :  { %v1123_v56 = vmul.f32 0.5, %v1122_v49 }
 0xe62   :  { %v1124_v58 = vsub.f32 1.5, %v1123_v56 }
 0xe64   :  { %v1125_v60 = vmul.f32 %v1614_v52, %v1124_v58 }
 0xe66   :  { %v1129_v53 = vsel %vm1128_vm11, %v1614_v52, %v1125_v60 }
 0xe67   :  { %v1131_v24 = vmul.f32 %v1129_v53, %v1097_v36 }
 0xe69   :  { %1477 = vmatmul.msk.f32.gmra.mxu2 %vm201_vm12, %v1131_v24 }
 0xedb   :  { %v1156_v11 = vpop.f32.mrf.mxu2 }
 0xedc   :  { %v1995_v23 = vadd.f32 %v1556_v32, %v1156_v11 }
 0xede   :  { %v1999_v40 = vmul.f32 %v1995_v23, %v1870_v46  ;;  %v1162_v39 = vmul.f32 0.5, %v1995_v23 }
 0xee0   :  { %v1166_v41 = vmul.f32 %v1999_v40, %v1999_v40 }
 0xee2   :  { %v1167_v21 = vmin.f32 %v1166_v41, 16.0 }
 0xee4   :  { %v1168_v44 = vmul.f32 2.1237322e-06, %v1167_v21  ;;  %v1179_v31 = vmul.f32 3.8918573e-05, %v1167_v21 }
 0xee6   :  { %v1169_v15 = vadd.f32 0.00028619796, %v1168_v44  ;;  %v1180_v63 = vadd.f32 0.001143296, %v1179_v31 }
 0xee8   :  { %v1170_v30 = vmul.f32 %v1169_v15, %v1167_v21  ;;  %v1181_v33 = vmul.f32 %v1180_v63, %v1167_v21 }
 0xeea   :  { %v1171_v1 = vadd.f32 0.0036580483, %v1170_v30  ;;  %v1182_v2 = vadd.f32 0.014752088, %v1181_v33 }
 0xeec   :  { %v1183_v36 = vmul.f32 %v1182_v2, %v1167_v21  ;;  %v1159_v4 = vpop.f32.mrf.mxu2  ;;  %v1172_v59 = vmul.f32 %v1171_v1, %v1167_v21 }
 0xeed   :  { %v2003_v5 = vadd.f32 %v1556_v32, %v1159_v4 }
 0xeee   :  { %v1184_v27 = vadd.f32 0.112945676, %v1183_v36  ;;  %v1173_v10 = vadd.f32 0.05243302, %v1172_v59 }
 0xeef   :  { %v2007_v6 = vmul.f32 %v2003_v5, %v1870_v46 }
 0xef0   :  { %v1185_v8 = vmul.f32 %v1184_v27, %v1167_v21  ;;  %v1174_v19 = vmul.f32 %v1173_v10, %v1167_v21 }
 0xef1   :  { %v1206_v9 = vmul.f32 %v2007_v6, %v2007_v6 }
 0xef2   :  { %v1186_v13 = vadd.f32 0.4994258, %v1185_v8  ;;  %v1175_v54 = vadd.f32 0.18741608, %v1174_v19  ;;  %v1282_v19 = vadd.s32 1, %v1800_v28 }
 0xef3   :  { %v1207_v14 = vmin.f32 %v1206_v9, 16.0 }
 0xef4   :  { %v1187_v17 = vmul.f32 %v1186_v13, %v1167_v21  ;;  %v1176_v53 = vmul.f32 %v1175_v54, %v1167_v21  ;;  %vm1284_vm7 = vcmp.eq.s32.totalorder %v1729_v12, %v1282_v19  ;;  %v1295_v54 = vadd.s32 2, %v1810_v35 }
 0xef5   :  { %v1208_v18 = vmul.f32 2.1237322e-06, %v1207_v14  ;;  %v1219_v47 = vmul.f32 3.8918573e-05, %v1207_v14  ;;  %vm1286_vm10 = vmand %vm1278_vm6, %vm1284_vm7 }
 0xef6   :  { %v1188_v20 = vadd.f32 1.0, %v1187_v17  ;;  %v1177_v34 = vadd.f32 1.1283791, %v1176_v53 }
 0xef7   :  { %v1209_v22 = vadd.f32 0.00028619796, %v1208_v18  ;;  %v1220_v51 = vadd.f32 0.001143296, %v1219_v47 }
 0xef8   :  { %1615 = vrcp.f32 %v1188_v20  ;;  %v1200_v50 = vand.u32 2147483648, %v1188_v20  ;;  %v1198_v37 = vand.u32 2147483647, %v1188_v20  ;;  %vm1194_vm14 = vweird.f32 %v1188_v20 }
 0xef9   :  { %v1210_v46 = vmul.f32 %v1209_v22, %v1207_v14  ;;  %v1221_v52 = vmul.f32 %v1220_v51, %v1207_v14  ;;  %v1178_v31 = vmul.f32 %v1177_v34, %v1999_v40  ;;  %v1294_v22 = vadd.s32 2, %v1800_v28  ;;  %v1557_v51 = vld [vmem:[#allocation2 + $0x1d0] ss:$0 sm:$0xff] }
 0xefa   :  { %v1201_v44 = vor.u32 1.1754944e-38, %v1200_v50  ;;  %vm1199_vm0 = vcmp.eq.f32.partialorder %v1198_v37, 8.507059e+37  ;;  %v1381_v50 = vld [vmem:[#allocation2 + $0x1f0] sm:$0xff]  ;;  %v1379_v37 = vld [vmem:[#allocation2 + $0x1e0] sm:$0xff] }
 0xefb   :  { %v1222_v49 = vadd.f32 0.014752088, %v1221_v52  ;;  %v1211_v56 = vadd.f32 0.0036580483, %v1210_v46  ;;  %vm1296_vm9 = vcmp.eq.s32.totalorder %v1729_v12, %v1294_v22  ;;  %1402 = vmatpush.msrb.mxu0 %v1381_v50 }
 0xefc   :  { %vm1298_vm11 = vmand %vm1288_vm8, %vm1296_vm9 }
 0xefd   :  { %v1223_v58 = vmul.f32 %v1222_v49, %v1207_v14  ;;  %v1212_v26 = vmul.f32 %v1211_v56, %v1207_v14 }
 0xefe   :  { %v1616_v60 = vpop.eup %1615 }
 0xeff   :  { %v1190_v24 = vmul.f32 %v1616_v60, %v1188_v20  ;;  %v1224_v25 = vadd.f32 0.112945676, %v1223_v58  ;;  %vm1195_vm13 = vweird.f32 %v1616_v60  ;;  %v1213_v41 = vadd.f32 0.05243302, %v1212_v26 }
 0xf00   :  { %vm1196_vm15 = vmor %vm1194_vm14, %vm1195_vm13  ;;  %vm1291_vm14 = vcmp.lt.s32.totalorder %v1810_v35, 14 }
 0xf01   :  { %v1191_v29 = vsub.f32 1.0, %v1190_v24  ;;  %v1225_v32 = vmul.f32 %v1224_v25, %v1207_v14  ;;  %v1214_v63 = vmul.f32 %v1213_v41, %v1207_v14  ;;  %vm1300_vm13 = vmor %vm1286_vm10, %vm1298_vm11 }
 0xf02   :  { %v1302_v56 = vsel %vm1300_vm13, 1.0, %v1681_v16 }
 0xf03   :  { %v1192_v11 = vmul.f32 %v1616_v60, %v1191_v29  ;;  %v1226_v48 = vadd.f32 0.4994258, %v1225_v32  ;;  %v1215_v33 = vadd.f32 0.18741608, %v1214_v63 }
 0xf05   :  { %v1193_v42 = vadd.f32 %v1616_v60, %v1192_v11  ;;  %v1227_v43 = vmul.f32 %v1226_v48, %v1207_v14  ;;  %v1216_v36 = vmul.f32 %v1215_v33, %v1207_v14  ;;  %v1163_v14 = vmul.f32 0.5, %v2003_v5  ;;  %v1380_v11 = vld [vmem:[#allocation2 + $0x1e8] sm:$0xff]  ;;  %v1378_v48 = vld [vmem:[#allocation2 + $0x1d8] sm:$0xff] }
 0xf06   :  { %1403 = vmatpush.msrb.mxu0 %v1380_v11 }
 0xf07   :  { %v1197_v21 = vsel %vm1196_vm15, %v1616_v60, %v1193_v42  ;;  %v1228_v45 = vadd.f32 1.0, %v1227_v43  ;;  %v1217_v40 = vadd.f32 1.1283791, %v1216_v36  ;;  %vm1297_vm15 = vcmp.eq.s32.totalorder %v1729_v12, %v1295_v54 }
 0xf08   :  { %v1202_v15 = vsel %vm1199_vm0, %v1201_v44, %v1197_v21  ;;  %vm1299_vm0 = vmand %vm1291_vm14, %vm1297_vm15  ;;  %1404 = vmatpush.msrb.mxu0 %v1379_v37 }
 0xf09   :  { %v1203_v0 = vmul.f32 %v1202_v15, %v1178_v31  ;;  %1617 = vrcp.f32 %v1228_v45  ;;  %v1240_v59 = vand.u32 2147483648, %v1228_v45  ;;  %v1238_v61 = vand.u32 2147483647, %v1228_v45 }
 0xf0a   :  { %vm1234_vm2 = vweird.f32 %v1228_v45  ;;  %v1218_v9 = vmul.f32 %v1217_v40, %v2007_v6  ;;  %v1303_v28 = vsel %vm1299_vm0, 1.0, %v1681_v16  ;;  %1405 = vmatpush.msrb.mxu0 %v1378_v48 }
 0xf0b   :  { %v1478_v30 = vclamps-f32 %v1203_v0, 1.0  ;;  %v1241_v8 = vor.u32 1.1754944e-38, %v1240_v59  ;;  %vm1239_vm5 = vcmp.eq.f32.partialorder %v1238_v61, 8.507059e+37 }
 0xf0d   :  { %v1246_v1 = vadd.f32 1.0, %v1478_v30 }
 0xf0f   :  { %v1618_v2 = vpop.eup %1617  ;;  %v1248_v3 = vmul.f32 %v1246_v1, %v1162_v39 }
 0xf10   :  { %v1230_v4 = vmul.f32 %v1618_v2, %v1228_v45  ;;  %vm1235_vm1 = vweird.f32 %v1618_v2 }
 0xf11   :  { %1266 = vmatmul.f32.vlgmr.msra.gmra.mxu3 %v1248_v3  ;;  %vm1236_vm3 = vmor %vm1234_vm2, %vm1235_vm1  ;;  %vm1336_vm1 = vcmask 259072  }
 0xf12   :  { %v1231_v55 = vsub.f32 1.0, %v1230_v4 }
 0xf14   :  { %v1232_v27 = vmul.f32 %v1618_v2, %v1231_v55 }
 0xf16   :  { %v1233_v7 = vadd.f32 %v1618_v2, %v1232_v27  ;;  %v1558_v27 = vld [vmem:[#allocation2 + $0x1f8] ss:$0 sm:$0xff] }
 0xf18   :  { %v1237_v10 = vsel %vm1236_vm3, %v1618_v2, %v1233_v7 }
 0xf19   :  { %v1242_v23 = vsel %vm1239_vm5, %v1241_v8, %v1237_v10 }
 0xf1a   :  { %v1243_v13 = vmul.f32 %v1242_v23, %v1218_v9 }
 0xf1c   :  { %v1479_v17 = vclamps-f32 %v1243_v13, 1.0 }
 0xf1e   :  { %v1247_v18 = vadd.f32 1.0, %v1479_v17 }
 0xf20   :  { %v1249_v47 = vmul.f32 %v1247_v18, %v1163_v14 }
 0xf22   :  { %1269 = vmatmul.f32.gmra.mxu3 %v1249_v47 }
 0xf94   :  { %v1267_v20 = vpop.f32.mrf.mxu3 }
 0xf95   :  { %v1273_v5 = vadd.f32 %v1267_v20, %v1976_v57 }
 0xf97   :  { %v1276_v49 = vadd.f32 %v1557_v51, %v1273_v5 }
 0xfa5   :  { %v1270_v6 = vpop.f32.mrf.mxu3 }
 0xfa6   :  { %v1274_v46 = vadd.f32 %v1270_v6, %v1981_v62 }
 0xfa8   :  { %v1277_v52 = vadd.f32 %v1557_v51, %v1274_v46 }
 0xfaa   :  { %1324 = vmatpush.msrb.mxu1 %v1277_v52 }
 0xfac   :  { %1325 = vmatpush.msrb.mxu1 %v1276_v49 }
 0xfad   :  { %1480 = vmatmul.msk.f32.vlgmr.msrb.gmra.mxu1 %vm289_vm4, %v1302_v56 }
 0xfb5   :  { %1481 = vmatmul.msk.f32.gmra.mxu1 %vm289_vm4, %v1303_v28 }
0x102a   :  { %v1327_v57 = vpop.f32.mrf.mxu1 }
0x102b   :  { %v1333_v62 = vsel %vm201_vm12, %v1327_v57, 0.0 }
0x102c   :  { %1334 = vadd.xlane.f32.xlu1 %v1333_v62 }
0x1032   :  { %v1330_v58 = vpop.f32.mrf.mxu1 }
0x1033   :  { %v1337_v60 = vsel %vm1336_vm1, %v1330_v58, 0.0 }
0x1034   :  { %1338 = vadd.xlane.f32.xlu0 %v1337_v60 }
0x109f   :  { %v1335_v53 = vpop.xlane.xlu1 %1334 }
0x10a0   :  { %v1340_v35 = vmul.f32 %v1335_v53, %v1751_v38 }
0x10a2   :  { %v1342_v24 = vsub.f32 %v1327_v57, %v1340_v35 }
0x10a4   :  { %v1344_v12 = vmul.f32 %v1342_v24, %v1342_v24 }
0x10a6   :  { %v1346_v25 = vsel %vm201_vm12, %v1344_v12, 0.0 }
0x10a7   :  { %1347 = vadd.xlane.f32.xlu2 %v1346_v25  ;;  %v1339_v26 = vpop.xlane.xlu0 %1338 }
0x10a8   :  { %v1341_v16 = vmul.f32 %v1339_v26, %v1751_v38 }
0x10aa   :  { %v1343_v29 = vsub.f32 %v1330_v58, %v1341_v16 }
0x10ac   :  { %v1345_v32 = vmul.f32 %v1343_v29, %v1343_v29 }
0x10ae   :  { %v1349_v34 = vsel %vm1336_vm1, %v1345_v32, 0.0 }
0x10af   :  { %1350 = vadd.xlane.f32.xlu1 %v1349_v34 }
0x111a   :  { %v1348_v41 = vpop.xlane.xlu2 %1347 }
0x111b   :  { %v1352_v42 = vmul.f32 %v1348_v41, %v1751_v38 }
0x111d   :  { %v1354_v43 = vadd.f32 1e-05, %v1352_v42 }
0x111f   :  { %1619 = vrsqrt.f32 %v1354_v43  ;;  %vm1362_vm2 = vweird.f32 %v1354_v43 }
0x1122   :  { %v1351_v44 = vpop.xlane.xlu1 %1350 }
0x1123   :  { %v1353_v31 = vmul.f32 %v1351_v44, %v1751_v38 }
0x1125   :  { %v1620_v21 = vpop.eup %1619  ;;  %v1355_v45 = vadd.f32 1e-05, %v1353_v31 }
0x1126   :  { %v1357_v15 = vmul.f32 %v1620_v21, %v1354_v43  ;;  %vm1363_vm4 = vweird.f32 %v1620_v21 }
0x1127   :  { %1621 = vrsqrt.f32 %v1355_v45  ;;  %vm1364_vm3 = vmor %vm1362_vm2, %vm1363_vm4  ;;  %vm1372_vm6 = vweird.f32 %v1355_v45 }
0x1128   :  { %v1358_v63 = vmul.f32 %v1620_v21, %v1357_v15 }
0x112a   :  { %v1359_v0 = vmul.f32 0.5, %v1358_v63 }
0x112c   :  { %v1360_v30 = vsub.f32 1.5, %v1359_v0 }
0x112d   :  { %v1622_v33 = vpop.eup %1621 }
0x112e   :  { %v1361_v39 = vmul.f32 %v1620_v21, %v1360_v30  ;;  %v1367_v1 = vmul.f32 %v1622_v33, %v1355_v45  ;;  %vm1373_vm5 = vweird.f32 %v1622_v33 }
0x112f   :  { %vm1374_vm7 = vmor %vm1372_vm6, %vm1373_vm5 }
0x1130   :  { %v1365_v2 = vsel %vm1364_vm3, %v1620_v21, %v1361_v39  ;;  %v1368_v3 = vmul.f32 %v1622_v33, %v1367_v1 }
0x1131   :  { %v1376_v36 = vmul.f32 %v1365_v2, %v1342_v24 }
0x1132   :  { %v1369_v4 = vmul.f32 0.5, %v1368_v3 }
0x1133   :  { %1482 = vmatmul.msk.f32.vlgmr.msrb.gmra.mxu0 %vm201_vm12, %v1376_v36 }
0x1134   :  { %v1370_v38 = vsub.f32 1.5, %v1369_v4 }
0x1136   :  { %v1371_v55 = vmul.f32 %v1622_v33, %v1370_v38 }
0x1138   :  { %v1375_v59 = vsel %vm1374_vm7, %v1622_v33, %v1371_v55 }
0x1139   :  { %v1377_v40 = vmul.f32 %v1375_v59, %v1343_v29 }
0x113b   :  { %1483 = vmatmul.msk.f32.gmra.mxu0 %vm201_vm12, %v1377_v40 }
0x11b0   :  { %v1407_v61 = vpop.f32.mrf.mxu0 }
0x11b1   :  { %v1408_v7 = vadd.f32 %v1558_v27, %v1407_v61 }
0x11b3   :  { %1413 = vst [vmem:[#allocation5] sm:$0xff] %v1408_v7 }
0x11b8   :  { %v1410_v8 = vpop.f32.mrf.mxu0 }
0x11b9   :  { %v1411_v9 = vadd.f32 %v1558_v27, %v1410_v8 }
0x11bb   :  { %1414 = vst [vmem:[#allocation5 + $0x8] sm:$0x3f] %v1411_v9 }
0x11bc   :  { %1427 = dma.vmem_to_hbm [thread:$0]  %s1420_s30, 256, %s1422_s6, [#allocation4], %s1676_s17, %s1676_s17, %s1677_s18  }
0x11bd   :  { %1673 = dma.done.wait [#allocation4], 256  }
0x11be   :  { %1674 = vsyncadd [#allocation4], 4294967040 }
0x11bf   :  { %1432 = vsyncpa [#allocation3], 1 }
0x11c0   :  { %1433 = vsyncpa [#allocation4], 1 }

</bundles_post_ra>
